<compile_context>
chip_gen: v6e
topology: v6e:2x2x1
jax: 0.10.0
libtpu: 0.0.40
codegen_flags: <defaults>
</compile_context>

<pallas_src>
import jax
import jax.numpy as jnp
import numpy as np
from jax.experimental import pallas as pl
from jax.experimental.pallas import tpu as pltpu


def miro_head_kernel(feat_ref, w_ref, b_ref, out_ref):
    """Fused global-average-pool + linear classifier (one (b, c) grid tile).

    feat_ref : (tb, HW, tc)  bf16  -- NHWC-flattened feature tile
    w_ref    : (tc, Npad)    bf16  -- fc weight tile (in_features x classes)
    b_ref    : (1, Npad)     f32   -- fc bias (lane-padded)
    out_ref  : (tb, Npad)    f32   -- logits tile (resident across channel axis)
    """
    ci = pl.program_id(1)
    hw = feat_ref.shape[1]

    # Spatial sum (f32 accumulation fused with the bf16 read), one tiny scale
    # on the (tb, tc) pooled tile, then cast to bf16 for a native MXU operand.
    pooled = (jnp.sum(feat_ref[...], axis=1, dtype=jnp.float32)
              * (1.0 / hw)).astype(jnp.bfloat16)

    # Partial contraction over this channel tile on the MXU (f32 accumulate).
    partial = jnp.dot(pooled, w_ref[...], preferred_element_type=jnp.float32)

    @pl.when(ci == 0)
    def _():
        out_ref[...] = b_ref[...] + partial          # bias broadcast init

    @pl.when(ci > 0)
    def _():
        out_ref[...] += partial


def prepare_classifier(w, b, *, w_dtype=jnp.bfloat16):
    """One-time (outside the hot path) pad + cast of the fc parameters.

    w: (C, N) -> (C, Npad) bf16, zero lane-padded
    b: (N,)   -> (1, Npad) f32,  zero lane-padded
    """
    C, N = w.shape
    Npad = ((N + 127) // 128) * 128
    w_p = jnp.zeros((C, Npad), w_dtype).at[:, :N].set(w.astype(w_dtype))
    b_p = jnp.zeros((1, Npad), jnp.float32).at[0, :N].set(b.astype(jnp.float32))
    return w_p, b_p


def _pick_tc(C, tb, HW, feat_itemsize, budget_bytes=8 << 20):
    """Largest channel tile (full C preferred) whose feat tile fits the VMEM
    budget.  Full C collapses the channel grid to one step, so the weight is
    fetched exactly once."""
    if C % 128 != 0:
        return C
    tc = C
    while (tc > 128 and tb * HW * tc * feat_itemsize > budget_bytes
           and (tc // 2) % 128 == 0 and C % (tc // 2) == 0):
        tc //= 2
    return tc


def miro_head(feat_nhwc, w_p, b_p, num_classes):
    """feat_nhwc: (B, H, W, C) (any float dtype; bf16 preferred),
    w_p: (C, Npad) bf16 pre-padded, b_p: (1, Npad) f32 -> (B, num_classes) f32."""
    B, H, W, C = feat_nhwc.shape
    HW = H * W
    Npad = w_p.shape[1]

    # Free metadata-only view: channels stay on the 128-lane axis.
    feat = feat_nhwc.reshape(B, HW, C)
    feat_itemsize = feat.dtype.itemsize

    # Batch tile: full B, or B/2 (multiple of 8) so the "parallel" batch grid
    # axis still has length 2 and shards across both v7x TensorCores.
    if B >= 16 and B % 16 == 0:
        tb = B // 2
    else:
        tb = B

    tc = _pick_tc(C, tb, HW, feat_itemsize)

    grid_b, grid_c = B // tb, C // tc
    grid = (grid_b, grid_c)

    # Accurate bytes: weight is re-fetched at each batch-tile transition only
    # if the channel axis has more than one step.
    w_reads = grid_b if grid_c > 1 else 1
    feat_bytes = B * HW * C * feat_itemsize
    bytes_accessed = (feat_bytes
                      + w_reads * C * Npad * w_p.dtype.itemsize
                      + Npad * 4
                      + B * Npad * 4)

    out = pl.pallas_call(
        miro_head_kernel,
        out_shape=jax.ShapeDtypeStruct((B, Npad), jnp.float32),
        grid_spec=pltpu.PrefetchScalarGridSpec(
            num_scalar_prefetch=0,
            grid=grid,
            in_specs=[
                pl.BlockSpec((tb, HW, tc), lambda bi, ci: (bi, 0, ci)),
                pl.BlockSpec((tc, Npad), lambda bi, ci: (ci, 0)),
                pl.BlockSpec((1, Npad), lambda bi, ci: (0, 0)),
            ],
            out_specs=pl.BlockSpec((tb, Npad), lambda bi, ci: (bi, 0)),
        ),
        compiler_params=pltpu.CompilerParams(
            dimension_semantics=("parallel", "arbitrary"),
        ),
        cost_estimate=pl.CostEstimate(
            flops=2 * B * C * Npad + B * C * HW,
            transcendentals=0,
            bytes_accessed=bytes_accessed,
        ),
    )(feat, w_p, b_p)

    return out[:, :num_classes]


def miro_head_ref(feat_nhwc, w_bf16, b):
    """Pure-JAX reference mirroring the kernel's numerics (bf16 feat/W, f32 acc)."""
    B = feat_nhwc.shape[0]
    C = feat_nhwc.shape[-1]
    feat = feat_nhwc.reshape(B, -1, C).astype(jnp.float32)
    pooled = (jnp.sum(feat, axis=1) * (1.0 / feat.shape[1])).astype(jnp.bfloat16)
    return jnp.dot(pooled, w_bf16, preferred_element_type=jnp.float32) + b


if __name__ == "__main__":
    # Small synthetic shapes (stand-in for the real 2048-channel ResNet map).
    B, C, H, W = 16, 512, 7, 7
    NUM_CLASSES = 100

    key = jax.random.PRNGKey(0)
    k_feat, k_w, k_b = jax.random.split(key, 3)

    # Synthetic backbone output: bf16 NHWC (a real backbone should emit bf16
    # NHWC end-to-end so no wrapper-side cast pass is needed).
    feat = jax.random.normal(k_feat, (B, H, W, C), dtype=jnp.float32).astype(
        jnp.bfloat16)

    # Deterministic fc init, PyTorch-Linear-style uniform(-1/sqrt(C), 1/sqrt(C)).
    bound = 1.0 / np.sqrt(C)
    w = jax.random.uniform(k_w, (C, NUM_CLASSES), jnp.float32, -bound, bound)
    b = jax.random.uniform(k_b, (NUM_CLASSES,), jnp.float32, -bound, bound)

    # One-time parameter prep (outside the hot path).
    w_p, b_p = prepare_classifier(w, b)

    out = miro_head(feat, w_p, b_p, NUM_CLASSES)
    out = jax.block_until_ready(out)

    ref = miro_head_ref(feat, w.astype(jnp.bfloat16), b)
    assert out.shape == (B, NUM_CLASSES)
    np.testing.assert_allclose(np.asarray(out), np.asarray(ref),
                               rtol=1e-2, atol=1e-2)
    print("KERNEL_OK")
</pallas_src>

<mosaic_0001>
module attributes {stable_mosaic.version = 11 : i64} {
  func.func @miro_head_kernel(%arg0: i32, %arg1: i32, %arg2: memref<8x49x512xbf16, #tpu.memory_space<vmem>>, %arg3: memref<512x128xbf16, #tpu.memory_space<vmem>>, %arg4: memref<1x128xf32, #tpu.memory_space<vmem>>, %arg5: memref<8x128xf32, #tpu.memory_space<vmem>>) attributes {dimension_semantics = [#tpu.dimension_semantics<parallel>, #tpu.dimension_semantics<arbitrary>], iteration_bounds = array<i64: 2, 1>, scalar_prefetch = 0 : i64, scratch_operands = 0 : i64, tpu.core_type = #tpu.core_type<tc>, window_params = [{transform_indices = @transform_0, window_bounds = array<i64: 8, 49, 512>}, {transform_indices = @transform_1, window_bounds = array<i64: 512, 128>}, {pipeline_mode = #tpu.pipeline_mode<synchronous>, transform_indices = @transform_2, window_bounds = array<i64: 1, 128>}, {transform_indices = @transform_3, window_bounds = array<i64: 8, 128>}]} {
    %c0 = arith.constant 0 : index
    %c0_0 = arith.constant 0 : index
    %c0_1 = arith.constant 0 : index
    %0 = vector.load %arg2[%c0, %c0_0, %c0_1] : memref<8x49x512xbf16, #tpu.memory_space<vmem>>, vector<8x49x512xbf16>
    %1 = arith.extf %0 : vector<8x49x512xbf16> to vector<8x49x512xf32>
    %cst = arith.constant dense<0.000000e+00> : vector<8x512xf32>
    %2 = vector.multi_reduction <add>, %1, %cst [1] : vector<8x49x512xf32> to vector<8x512xf32>
    %cst_2 = arith.constant 0.0204081628 : f32
    %3 = vector.broadcast %cst_2 : f32 to vector<8x512xf32>
    %4 = arith.mulf %2, %3 : vector<8x512xf32>
    %5 = arith.truncf %4 : vector<8x512xf32> to vector<8x512xbf16>
    %c0_3 = arith.constant 0 : index
    %c0_4 = arith.constant 0 : index
    %6 = vector.load %arg3[%c0_3, %c0_4] : memref<512x128xbf16, #tpu.memory_space<vmem>>, vector<512x128xbf16>
    %cst_5 = arith.constant dense<0.000000e+00> : vector<8x128xf32>
    %7 = tpu.matmul %5, %6, %cst_5 {dimension_numbers = #tpu.dot_dimension_numbers<[1], [0], [0], [1], [0, 0, 1, 1], [], []>} : vector<8x512xbf16>, vector<512x128xbf16>, vector<8x128xf32> -> vector<8x128xf32>
    %c0_i32 = arith.constant 0 : i32
    %8 = arith.cmpi eq, %arg1, %c0_i32 : i32
    %9 = arith.extui %8 : i1 to i32
    %c0_i32_6 = arith.constant 0 : i32
    %10 = arith.cmpi ne, %9, %c0_i32_6 : i32
    scf.if %10 {
      %c0_9 = arith.constant 0 : index
      %c0_10 = arith.constant 0 : index
      %14 = vector.load %arg4[%c0_9, %c0_10] : memref<1x128xf32, #tpu.memory_space<vmem>>, vector<1x128xf32>
      %15 = vector.broadcast %14 : vector<1x128xf32> to vector<8x128xf32>
      %16 = arith.addf %15, %7 : vector<8x128xf32>
      %c0_11 = arith.constant 0 : index
      %c0_12 = arith.constant 0 : index
      %17 = vector.load %arg5[%c0_11, %c0_12] : memref<8x128xf32, #tpu.memory_space<vmem>>, vector<8x128xf32>
      tpu.vector_store %arg5[%c0_11, %c0_12], %16 {strides = array<i32>} : memref<8x128xf32, #tpu.memory_space<vmem>>, vector<8x128xf32>,
    } else {
    }
    %c0_i32_7 = arith.constant 0 : i32
    %11 = arith.cmpi sgt, %arg1, %c0_i32_7 : i32
    %12 = arith.extui %11 : i1 to i32
    %c0_i32_8 = arith.constant 0 : i32
    %13 = arith.cmpi ne, %12, %c0_i32_8 : i32
    scf.if %13 {
      %c0_9 = arith.constant 0 : index
      %c0_10 = arith.constant 0 : index
      %14 = vector.load %arg5[%c0_9, %c0_10] : memref<8x128xf32, #tpu.memory_space<vmem>>, vector<8x128xf32>
      %15 = arith.addf %14, %7 : vector<8x128xf32>
      %c0_11 = arith.constant 0 : index
      %c0_12 = arith.constant 0 : index
      %16 = vector.load %arg5[%c0_11, %c0_12] : memref<8x128xf32, #tpu.memory_space<vmem>>, vector<8x128xf32>
      tpu.vector_store %arg5[%c0_11, %c0_12], %15 {strides = array<i32>} : memref<8x128xf32, #tpu.memory_space<vmem>>, vector<8x128xf32>,
    } else {
    }
    return
  }
  func.func @transform_0(%arg0: i32, %arg1: i32) -> (i32, i32, i32) {
    %c0_i32 = arith.constant 0 : i32
    %c0_i32_0 = arith.constant 0 : i32
    return %arg0, %c0_i32, %arg1 : i32, i32, i32
  }
  func.func @transform_1(%arg0: i32, %arg1: i32) -> (i32, i32) {
    %c0_i32 = arith.constant 0 : i32
    %c0_i32_0 = arith.constant 0 : i32
    return %arg1, %c0_i32 : i32, i32
  }
  func.func @transform_2(%arg0: i32, %arg1: i32) -> (i32, i32) {
    %c0_i32 = arith.constant 0 : i32
    %c0_i32_0 = arith.constant 0 : i32
    %c0_i32_1 = arith.constant 0 : i32
    return %c0_i32, %c0_i32_0 : i32, i32
  }
  func.func @transform_3(%arg0: i32, %arg1: i32) -> (i32, i32) {
    %c0_i32 = arith.constant 0 : i32
    %c0_i32_0 = arith.constant 0 : i32
    return %arg0, %c0_i32 : i32, i32
  }
}

</mosaic_0001>

<bundles_post_ra>
// kernel: tpu_custom_call.1
= control target key start
LH: loop header
LB: loop body
LE: loop exit
PB: predicated region body
PF: predicated region fallthrough
CT: control target
= control target key end

     0   :  { %8 = vsyncpa [#allocation3], 0  ;;  %s3107_s0 = inlined_call_operand.vmem [shape: bf16[16,49,512], index: 0, kind: input, shape index: {}]   ;;  %s3108_s1 = inlined_call_operand.vmem [shape: bf16[512,128], index: 1, kind: input, shape index: {}]   ;;  %s3109_s2 = inlined_call_operand.vmem [shape: f32[1,128], index: 2, kind: input, shape index: {}]   ;;  %s3110_s3 = inlined_call_operand.hbm [shape: f32[16,128], index: 3, kind: output, shape index: {}]  }
   0x1   :  { %10 = vsyncpa [#allocation3 + $0x1], 0  ;;  %s1884_s12 = smov 0   ;;  %s1886_s13 = smov 0  }
   0x2   :  { %s1888_s14 = smov 0   ;;  %s1890_s15 = smov 0  }
   0x3   :  { %s1892_s16 = smov 0   ;;  %s1894_s17 = smov 0  }
   0x4 LB: > { %s1607_s18 = sadd.s32 4294967295, %s1861_s17   ;;  %s1608_s19 = sadd.s32 4294967294, %s1861_s17   ;;  %s1861_s17 = sphi %s1894_s17, %s16_s17   ;;  %s1857_s16 = sphi %s1892_s16, %s3589_s16   ;;  %s1853_s15 = sphi %s1890_s15, %s3588_s15   ;;  %s1849_s14 = sphi %s1888_s14, %s3587_s14   ;;  %s1845_s13 = sphi %s1886_s13, %s3586_s13   ;;  %s1841_s12 = sphi %s1884_s12, %s3585_s12  }
   0x5   : > { %s28_s20 = sadd.s32 1, %s1857_s16  ;;  %s110_s21 = sadd.s32 1, %s1849_s14 }
   0x6   : > { %p30_p0 = scmp.ge.s32.totalorder %s28_s20, 2  ;;  %p120_p1 = scmp.ne.s32.totalorder %s1849_s14, %s1845_s13 }
   0x7   : > { %p121_p2 = scmp.eq.s32.totalorder %s1607_s18, 1  ;;  %p126_p3 = scmp.ne.s32.totalorder %s1845_s13, %s1841_s12 }
   0x8   : > { %s3591_s20 = smov (%p30_p0, %s28_s20), 0  ;;  %p127_p5 = scmp.eq.s32.totalorder %s1608_s19, 1 }
   0x9   : > { %p1924_p4 = por %p121_p2, %p120_p1  ;;  %s107_s23 = ssub.s32 %s1857_s16, %s3591_s20 }
   0xa   : > { %p1612_p6 = scmp.ge.s32.totalorder %s1861_s17, 1  ;;  %p108_p7 = scmp.eq.s32.totalorder %s107_s23, 0 }
   0xb   : > { %p1931_p8 = por %p127_p5, %p126_p3  ;;  %p172_p9 = scmp.lt.s32.totalorder %s1861_s17, 3 }
   0xc   : > { %s1937_s25 = scalar_select %p108_p7, %s1849_s14, %s110_s21  }
   0xd   : > { %p173_p10 = pnand %p1612_p6, %p172_p9 }
   0xf   : > { %176 = sbr.rel (%p173_p10) target bundleno = 473 (0x1d9), region = 32 }
  0x14   : > { %v1753_v0 = vld [vmem:[%s3108_s1 + $0x78] sm:$0xff]   ;;  %v1757_v4 = vld [vmem:[%s3108_s1 + $0x70] sm:$0xff]   ;;  %v1761_v8 = vld [vmem:[%s3108_s1 + $0x68] sm:$0xff]   ;;  %s1614_s18 = sshll.u32 %s1853_s15, 3  ;;  %vm566_vm0 = vcmask 1040384   ;;  %vm1170_vm1 = vcmask 1041409  }
  0x15   : > { %v1754_v1 = vld [vmem:[%s3108_s1 + $0xf8] sm:$0xff]   ;;  %1653 = vmatprep.subr.bf16.mxu0 %v1753_v0  ;;  %v1758_v5 = vld [vmem:[%s3108_s1 + $0xf0] sm:$0xff]   ;;  %v1762_v9 = vld [vmem:[%s3108_s1 + $0xe8] sm:$0xff]   ;;  %p208_p11 = scmp.lt.s32.totalorder %s1614_s18, 15  ;;  %vm1172_vm2 = vcmask 1042434   ;;  %vm1174_vm3 = vcmask 1043459  }
  0x16   : > { %v1755_v2 = vld [vmem:[%s3108_s1 + $0x38] sm:$0xff]   ;;  %1675 = vmatprep.subr.bf16.mxu1 %v1754_v1  ;;  %v1759_v6 = vld [vmem:[%s3108_s1 + $0x30] sm:$0xff]   ;;  %v1763_v10 = vld [vmem:[%s3108_s1 + $0x28] sm:$0xff]   ;;  %vm1176_vm4 = vcmask 1044484   ;;  %vm1178_vm5 = vcmask 1045509   ;;  %vm1180_vm6 = vcmask 1046534  }
  0x17   : > { %v1756_v3 = vld [vmem:[%s3108_s1 + $0xb8] sm:$0xff]   ;;  %1654 = vmatpush3.bf16.msra.mxu0 %v1755_v2  ;;  %v1760_v7 = vld [vmem:[%s3108_s1 + $0xb0] sm:$0xff]   ;;  %v1764_v11 = vld [vmem:[%s3108_s1 + $0xa8] sm:$0xff]   ;;  %s3593_s18 = smov (!%p208_p11, %s1614_s18), 15  ;;  %vm1182_vm7 = vcmask 1047559   ;;  %s203_s28 = sand.u32 1, %s1845_s13  }
  0x18   : > { %1676 = vmatpush3.bf16.msra.mxu1 %v1756_v3  ;;  %1655 = vmatprep.subr.bf16.mxu0 %v1757_v4  ;;  %v1765_v12 = vld [vmem:[%s3108_s1 + $0x60] sm:$0xff]   ;;  %v1769_v16 = vld [vmem:[%s3108_s1 + $0x58] sm:$0xff]   ;;  %v1773_v20 = vld [vmem:[%s3108_s1 + $0x50] sm:$0xff]   ;;  %s1697_s29 = smul.u32 112, %s3593_s18  ;;  %s1650_s5 = sshll.u32 %s1853_s15, 7 }
  0x19   : > { %1677 = vmatprep.subr.bf16.mxu1 %v1758_v5  ;;  %v1766_v13 = vld [vmem:[%s3108_s1 + $0xe0] sm:$0xff]   ;;  %v1770_v17 = vld [vmem:[%s3108_s1 + $0xd8] sm:$0xff]   ;;  %v1774_v21 = vld [vmem:[%s3108_s1 + $0xd0] sm:$0xff]   ;;  %s1517_s10 = scalar_lea.hbm %s3110_s3, %s1650_s5  ;;  %s1506_s18 = scalar_lea.sflag [#allocation3], %s203_s28 }
  0x1a   : > { %v1767_v14 = vld [vmem:[%s3108_s1 + $0x20] sm:$0xff]   ;;  %v1771_v18 = vld [vmem:[%s3108_s1 + $0x18] sm:$0xff]   ;;  %v1775_v22 = vld [vmem:[%s3108_s1 + $0x10] sm:$0xff]   ;;  %s2033_s19 = scalar_lea.vmem %s3107_s0, %s1697_s29  ;;  %s1613_s29 = sshll.u32 %s203_s28, 3 }
  0x1b   : > { %1656 = vmatpush3.bf16.msra.mxu0 %v1759_v6  ;;  %v1768_v15 = vld [vmem:[%s3108_s1 + $0xa0] sm:$0xff]   ;;  %v1772_v19 = vld [vmem:[%s3108_s1 + $0x98] sm:$0xff]   ;;  %v1776_v23 = vld [vmem:[%s3108_s1 + $0x90] sm:$0xff]   ;;  %s205_s6 = scalar_lea.vmem [#allocation2], %s1613_s29 }
  0x1c   : > { %1678 = vmatpush3.bf16.msra.mxu1 %v1760_v7  ;;  %1657 = vmatprep.subr.bf16.mxu0 %v1761_v8  ;;  %v1777_v24 = vld [vmem:[%s3108_s1 + $0x48] sm:$0xff]   ;;  %v1781_v28 = vld [vmem:[%s3108_s1 + $0x40] sm:$0xff]   ;;  %v2045_v33 = vld [vmem:[%s2033_s19 + $0x10] sm:$0xff]  ;;  %s1519_s7 = sshll.u32 %s205_s6, 4  ;;  %s1520_s7 = int_to_ptr.vmem [resolvable:$true] %s1519_s7 }
  0x1d   : > { %1679 = vmatprep.subr.bf16.mxu1 %v1762_v9  ;;  %v1778_v25 = vld [vmem:[%s3108_s1 + $0xc8] sm:$0xff]   ;;  %v1782_v29 = vld [vmem:[%s3108_s1 + $0xc0] sm:$0xff]   ;;  %3208 = vst [vmem:[#allocation6_spill] sm:$0xff] %v2045_v33  ;;  %v2051_v35 = vld [vmem:[%s2033_s19 + $0x30] sm:$0xff]  ;;  %s1785_s11 = scalar_lea.vmem %s1520_s7, 128 }
  0x1e   : > { %v1779_v26 = vld [vmem:[%s3108_s1 + $0x8] sm:$0xff]   ;;  %v1783_v30 = vld [vmem:[%s3108_s1] sm:$0xff]   ;;  %3210 = vst [vmem:[#allocation8_spill] sm:$0xff] %v2051_v35  ;;  %v2057_v37 = vld [vmem:[%s2033_s19 + $0x50] sm:$0xff]  ;;  %p1786_p12 = scmp.ne.s32.totalorder %s1520_s7, %s1785_s11 }
  0x1f   : > { %1658 = vmatpush3.bf16.msra.mxu0 %v1763_v10  ;;  %v1780_v27 = vld [vmem:[%s3108_s1 + $0x88] sm:$0xff]   ;;  %v1784_v31 = vld [vmem:[%s3108_s1 + $0x80] sm:$0xff]   ;;  %3212 = vst [vmem:[#allocation10_spill] sm:$0xff] %v2057_v37  ;;  %v2067_v43 = vld [vmem:[%s2033_s19 + $0x70] sm:$0xff] }
  0x20   : > { %1680 = vmatpush3.bf16.msra.mxu1 %v1764_v11  ;;  %1659 = vmatprep.subr.bf16.mxu0 %v1765_v12  ;;  %v2042_v32 = vld [vmem:[%s2033_s19] sm:$0xff]  ;;  %3214 = vst [vmem:[#allocation12_spill] sm:$0xff] %v2067_v43  ;;  %v2077_v49 = vld [vmem:[%s2033_s19 + $0x90] sm:$0xff]  ;;  %v3266_v1 = vunpack.c.h.bf16 %v2067_v43  ;;  %p1787_p13 = pnand %p1786_p12, %p1924_p4 }
  0x21   : > { %1681 = vmatprep.subr.bf16.mxu1 %v1766_v13  ;;  %3207 = vst [vmem:[#allocation5_spill] sm:$0xff] %v2042_v32  ;;  %v2048_v34 = vld [vmem:[%s2033_s19 + $0x20] sm:$0xff]  ;;  %3216 = vst [vmem:[#allocation14_spill] sm:$0xff] %v2077_v49  ;;  %v2083_v51 = vld [vmem:[%s2033_s19 + $0xb0] sm:$0xff]  ;;  %v3263_v39 = vunpack.c.h.bf16 %v2042_v32 }
  0x22   : > { %3209 = vst [vmem:[#allocation7_spill] sm:$0xff] %v2048_v34  ;;  %v2054_v36 = vld [vmem:[%s2033_s19 + $0x40] sm:$0xff]  ;;  %3218 = vst [vmem:[#allocation16_spill] sm:$0xff] %v2083_v51  ;;  %v2093_v57 = vld [vmem:[%s2033_s19 + $0xd0] sm:$0x11]  ;;  %p1788_p0 = pneg %p1787_p13 }
  0x23   : > { %1660 = vmatpush3.bf16.msra.mxu0 %v1767_v14  ;;  %3211 = vst [vmem:[#allocation9_spill] sm:$0xff] %v2054_v36  ;;  %v2064_v42 = vld [vmem:[%s2033_s19 + $0x60] sm:$0x11]  ;;  %3220 = vst [vmem:[#allocation18_spill] sm:$0xff] %v2093_v57  ;;  %v2103_v63 = vld [vmem:[%s2033_s19 + $0xf0] sm:$0xff] }
  0x24   : > { %1682 = vmatpush3.bf16.msra.mxu1 %v1768_v15  ;;  %1661 = vmatprep.subr.bf16.mxu0 %v1769_v16  ;;  %3213 = vst [vmem:[#allocation11_spill] sm:$0xff] %v2064_v42  ;;  %v2070_v44 = vld [vmem:[%s2033_s19 + $0x80] sm:$0xff]  ;;  %3222 = vst [vmem:[#allocation20_spill] sm:$0xff] %v2103_v63  ;;  %v2113_v5 = vld [vmem:[%s2033_s19 + $0x110] sm:$0xff]  ;;  %v3270_v32 = vunpack.c.h.bf16 %v2103_v63 }
  0x25   : > { %1683 = vmatprep.subr.bf16.mxu1 %v1770_v17  ;;  %3215 = vst [vmem:[#allocation13_spill] sm:$0xff] %v2070_v44  ;;  %v2080_v50 = vld [vmem:[%s2033_s19 + $0xa0] sm:$0xff]  ;;  %3224 = vst [vmem:[#allocation22_spill] sm:$0xff] %v2113_v5  ;;  %v2123_v11 = vld [vmem:[%s2033_s19 + $0x130] sm:$0xff] }
  0x26   : > { %3217 = vst [vmem:[#allocation15_spill] sm:$0xff] %v2080_v50  ;;  %v2090_v56 = vld [vmem:[%s2033_s19 + $0xc0] sm:$0xff]  ;;  %3226 = vst [vmem:[#allocation24_spill] sm:$0xff] %v2123_v11  ;;  %v2133_v17 = vld [vmem:[%s2033_s19 + $0x150] sm:$0xff] }
  0x27   : > { %1662 = vmatpush3.bf16.msra.mxu0 %v1771_v18  ;;  %3219 = vst [vmem:[#allocation17_spill] sm:$0xff] %v2090_v56  ;;  %v2100_v62 = vld [vmem:[%s2033_s19 + $0xe0] sm:$0xff]  ;;  %3228 = vst [vmem:[#allocation26_spill] sm:$0xff] %v2133_v17  ;;  %v2163_v6 = vld [vmem:[%s2033_s19 + $0x1b0] sm:$0x11] }
  0x28   : > { %1684 = vmatpush3.bf16.msra.mxu1 %v1772_v19  ;;  %1663 = vmatprep.subr.bf16.mxu0 %v1773_v20  ;;  %3221 = vst [vmem:[#allocation19_spill] sm:$0xff] %v2100_v62  ;;  %v2110_v4 = vld [vmem:[%s2033_s19 + $0x100] sm:$0xff]  ;;  %3234 = vst [vmem:[#allocation32_spill] sm:$0xff] %v2163_v6  ;;  %v2173_v47 = vld [vmem:[%s2033_s19 + $0x1d0] sm:$0xff] }
  0x29   : > { %1685 = vmatprep.subr.bf16.mxu1 %v1774_v21  ;;  %3223 = vst [vmem:[#allocation21_spill] sm:$0xff] %v2110_v4  ;;  %v2120_v10 = vld [vmem:[%s2033_s19 + $0x120] sm:$0xff]  ;;  %3236 = vst [vmem:[#allocation34_spill] sm:$0xff] %v2173_v47  ;;  %v2183_v0 = vld [vmem:[%s2033_s19 + $0x1f0] sm:$0xff] }
  0x2a   : > { %3225 = vst [vmem:[#allocation23_spill] sm:$0xff] %v2120_v10  ;;  %v2130_v16 = vld [vmem:[%s2033_s19 + $0x140] sm:$0x11]  ;;  %3238 = vst [vmem:[#allocation36_spill] sm:$0xff] %v2183_v0  ;;  %v2193_v40 = vld [vmem:[%s2033_s19 + $0x210] sm:$0xff] }
  0x2b   : > { %1664 = vmatpush3.bf16.msra.mxu0 %v1775_v22  ;;  %3227 = vst [vmem:[#allocation25_spill] sm:$0xff] %v2130_v16  ;;  %v2140_v22 = vld [vmem:[%s2033_s19 + $0x160] sm:$0xff]  ;;  %3240 = vst [vmem:[#allocation38_spill] sm:$0xff] %v2193_v40  ;;  %v2203_v55 = vld [vmem:[%s2033_s19 + $0x230] sm:$0xff] }
  0x2c   : > { %1686 = vmatpush3.bf16.msra.mxu1 %v1776_v23  ;;  %1665 = vmatprep.subr.bf16.mxu0 %v1777_v24  ;;  %3229 = vst [vmem:[#allocation27_spill] sm:$0xff] %v2140_v22  ;;  %v2143_v23 = vld [vmem:[%s2033_s19 + $0x170] sm:$0xff]  ;;  %v2160_v54 = vld [vmem:[%s2033_s19 + $0x1a0] sm:$0xff]  ;;  %3242 = vst [vmem:[#allocation40_spill] sm:$0xff] %v2203_v55  ;;  %v3273_v43 = vunpack.c.h.bf16 %v2140_v22 }
  0x2d   : > { %1687 = vmatprep.subr.bf16.mxu1 %v1778_v25  ;;  %3230 = vst [vmem:[#allocation28_spill] sm:$0xff] %v2143_v23  ;;  %3233 = vst [vmem:[#allocation31_spill] sm:$0xff] %v2160_v54  ;;  %v2170_v2 = vld [vmem:[%s2033_s19 + $0x1c0] sm:$0xff]  ;;  %v2213_v9 = vld [vmem:[%s2033_s19 + $0x250] sm:$0xff] }
  0x2e   : > { %3235 = vst [vmem:[#allocation33_spill] sm:$0xff] %v2170_v2  ;;  %v2180_v14 = vld [vmem:[%s2033_s19 + $0x1e0] sm:$0xff]  ;;  %3244 = vst [vmem:[#allocation42_spill] sm:$0xff] %v2213_v9  ;;  %v2223_v7 = vld [vmem:[%s2033_s19 + $0x270] sm:$0xff] }
  0x2f   : > { %1666 = vmatpush3.bf16.msra.mxu0 %v1779_v26  ;;  %3237 = vst [vmem:[#allocation35_spill] sm:$0xff] %v2180_v14  ;;  %v2190_v58 = vld [vmem:[%s2033_s19 + $0x200] sm:$0xff]  ;;  %3246 = vst [vmem:[#allocation44_spill] sm:$0xff] %v2223_v7  ;;  %v2233_v60 = vld [vmem:[%s2033_s19 + $0x290] sm:$0x11] }
  0x30   : > { %1688 = vmatpush3.bf16.msra.mxu1 %v1780_v27  ;;  %1667 = vmatprep.subr.bf16.mxu0 %v1781_v28  ;;  %v2150_v28 = vld [vmem:[%s2033_s19 + $0x180] sm:$0xff]  ;;  %3239 = vst [vmem:[#allocation37_spill] sm:$0xff] %v2190_v58  ;;  %3248 = vst [vmem:[#allocation46_spill] sm:$0xff] %v2233_v60  ;;  %v2243_v18 = vld [vmem:[%s2033_s19 + $0x2b0] sm:$0xff]  ;;  %v502_v24 = vunpack.c.h.bf16 %v2233_v60 }
  0x31   : > { %1689 = vmatprep.subr.bf16.mxu1 %v1782_v29  ;;  %3231 = vst [vmem:[#allocation29_spill] sm:$0xff] %v2150_v28  ;;  %v2153_v29 = vld [vmem:[%s2033_s19 + $0x190] sm:$0xff]  ;;  %v2200_v13 = vld [vmem:[%s2033_s19 + $0x220] sm:$0x11]  ;;  %3250 = vst [vmem:[#allocation48_spill] sm:$0xff] %v2243_v18  ;;  %v510_v21 = vunpack.c.h.bf16 %v2243_v18 }
  0x32   : > { %3232 = vst [vmem:[#allocation30_spill] sm:$0xff] %v2153_v29  ;;  %3241 = vst [vmem:[#allocation39_spill] sm:$0xff] %v2200_v13  ;;  %v2210_v38 = vld [vmem:[%s2033_s19 + $0x240] sm:$0xff]  ;;  %v2263_v20 = vld [vmem:[%s2033_s19 + $0x2f0] sm:$0xff] }
  0x33   : > { %1668 = vmatpush3.bf16.msra.mxu0 %v1783_v30  ;;  %3243 = vst [vmem:[#allocation41_spill] sm:$0xff] %v2210_v38  ;;  %v2220_v27 = vld [vmem:[%s2033_s19 + $0x260] sm:$0xff]  ;;  %3254 = vst [vmem:[#allocation52_spill] sm:$0xff] %v2263_v20  ;;  %v2273_v52 = vld [vmem:[%s2033_s19 + $0x310] sm:$0xff]  ;;  %v3265_v20 = vunpack.c.h.bf16 %v2064_v42 }
  0x34   : > { %1690 = vmatpush3.bf16.msra.mxu1 %v1784_v31  ;;  %3245 = vst [vmem:[#allocation43_spill] sm:$0xff] %v2220_v27  ;;  %v2230_v53 = vld [vmem:[%s2033_s19 + $0x280] sm:$0xff]  ;;  %v2253_v31 = vld [vmem:[%s2033_s19 + $0x2d0] sm:$0xff]  ;;  %3256 = vst [vmem:[#allocation54_spill] sm:$0xff] %v2273_v52  ;;  %v534_v60 = vunpack.c.h.bf16 %v2273_v52  ;;  %v3268_v52 = vunpack.c.h.bf16 %v2093_v57 }
  0x35   : > { %3247 = vst [vmem:[#allocation45_spill] sm:$0xff] %v2230_v53  ;;  %v2240_v48 = vld [vmem:[%s2033_s19 + $0x2a0] sm:$0xff]  ;;  %3252 = vst [vmem:[#allocation50_spill] sm:$0xff] %v2253_v31  ;;  %v2283_v19 = vld [vmem:[%s2033_s19 + $0x330] sm:$0xff]  ;;  %v518_v30 = vunpack.c.h.bf16 %v2253_v31 }
  0x36   : > { %3249 = vst [vmem:[#allocation47_spill] sm:$0xff] %v2240_v48  ;;  %v2250_v3 = vld [vmem:[%s2033_s19 + $0x2c0] sm:$0xff]  ;;  %v506_v8 = vunpack.c.h.bf16 %v2240_v48  ;;  %3258 = vst [vmem:[#allocation56_spill] sm:$0xff] %v2283_v19  ;;  %v2293_v59 = vld [vmem:[%s2033_s19 + $0x350] sm:$0xff]  ;;  %v542_v18 = vunpack.c.h.bf16 %v2283_v19  ;;  %v3264_v19 = vunpack.c.h.bf16 %v2045_v33  ;;  %v632_v12 = vsel %vm566_vm0, %v3268_v52, 0.0 }
  0x37   : > { %3251 = vst [vmem:[#allocation49_spill] sm:$0xff] %v2250_v3  ;;  %v2260_v45 = vld [vmem:[%s2033_s19 + $0x2e0] sm:$0xff]  ;;  %v514_v15 = vunpack.c.h.bf16 %v2250_v3  ;;  %3260 = vst [vmem:[#allocation58_spill] sm:$0xff] %v2293_v59  ;;  %v2303_v26 = vld [vmem:[%s2033_s19 + $0x370] sm:$0x11]  ;;  %v3275_v52 = vunpack.c.h.bf16 %v2048_v34 }
  0x38   : > { %3253 = vst [vmem:[#allocation51_spill] sm:$0xff] %v2260_v45  ;;  %v2270_v46 = vld [vmem:[%s2033_s19 + $0x300] sm:$0x11]  ;;  %3262 = vst [vmem:[#allocation60_spill] sm:$0xff] %v2303_v26  ;;  %v575_v45 = vadd.f32 %v3264_v19, %v3263_v39  ;;  %v3271_v39 = vunpack.c.h.bf16 %v2130_v16  ;;  %v2685_v34 = vld [vmem:[%s2033_s19 + $0x368] sm:$0xff] }
  0x39   : > { %3255 = vst [vmem:[#allocation53_spill] sm:$0xff] %v2270_v46  ;;  %v2280_v25 = vld [vmem:[%s2033_s19 + $0x320] sm:$0xff]  ;;  %v530_v31 = vunpack.c.h.bf16 %v2270_v46  ;;  %v550_v46 = vunpack.c.h.bf16 %v2293_v59  ;;  %v3267_v59 = vunpack.c.h.bf16 %v2070_v44 }
  0x3a   : > { %3257 = vst [vmem:[#allocation55_spill] sm:$0xff] %v2280_v25  ;;  %v2290_v61 = vld [vmem:[%s2033_s19 + $0x340] sm:$0xff]  ;;  %v538_v41 = vunpack.c.h.bf16 %v2280_v25  ;;  %v3269_v25 = vunpack.c.h.bf16 %v2100_v62  ;;  %v684_v19 = vsel %vm566_vm0, %v3271_v39, 0.0  ;;  %v576_v57 = vadd.f32 %v575_v45, %v3275_v52 }
  0x3b   : > { %3259 = vst [vmem:[#allocation57_spill] sm:$0xff] %v2290_v61  ;;  %v2300_v48 = vld [vmem:[%s2033_s19 + $0x360] sm:$0xff]  ;;  %v546_v53 = vunpack.c.h.bf16 %v2290_v61  ;;  %v580_v61 = vsel %vm566_vm0, %v3265_v20, 0.0  ;;  %v627_v3 = vadd.f32 %v3267_v59, %v3266_v1  ;;  %v3272_v20 = vunpack.c.h.bf16 %v2133_v17 }
  0x3c   : > { %3261 = vst [vmem:[#allocation59_spill] sm:$0xff] %v2300_v48  ;;  %v679_v26 = vadd.f32 %v3270_v32, %v3269_v25  ;;  %v3274_v59 = vunpack.c.h.bf16 %v2163_v6  ;;  %v3276_v62 = vunpack.c.h.bf16 %v2077_v49  ;;  %v3277_v32 = vunpack.c.h.bf16 %v2170_v2  ;;  %v2675_v49 = vld [vmem:[%s2033_s19 + $0x348] sm:$0xff] }
  0x3d   : > { %v731_v42 = vadd.f32 %v3273_v43, %v3272_v20  ;;  %v3278_v25 = vunpack.c.h.bf16 %v2173_v47  ;;  %v3279_v17 = vunpack.c.h.bf16 %v2200_v13  ;;  %v3280_v43 = vunpack.c.h.bf16 %v2110_v4  ;;  %v2668_v4 = vld [vmem:[%s2033_s19 + $0x338] sm:$0xff]  ;;  %3339 = vst [vmem:[#allocation88_spill] sm:$0xff] %v2675_v49 }
  0x3e   : > { %v736_v1 = vsel %vm566_vm0, %v3274_v59, 0.0  ;;  %v628_v63 = vadd.f32 %v627_v3, %v3276_v62  ;;  %v3281_v59 = vunpack.c.h.bf16 %v2143_v23  ;;  %v3282_v45 = vunpack.c.h.bf16 %v2203_v55  ;;  %v2648_v23 = vld [vmem:[%s2033_s19 + $0x2f8] sm:$0xff]  ;;  %3338 = vst [vmem:[#allocation87_spill] sm:$0xff] %v2668_v4 }
  0x3f   : > { %v783_v39 = vadd.f32 %v3278_v25, %v3277_v32  ;;  %v788_v22 = vsel %vm566_vm0, %v3279_v17, 0.0  ;;  %v680_v20 = vadd.f32 %v679_v26, %v3280_v43  ;;  %v3283_v52 = vunpack.c.h.bf16 %v2210_v38  ;;  %v2628_v38 = vld [vmem:[%s2033_s19 + $0x2b8] sm:$0xff]  ;;  %3334 = vst [vmem:[#allocation83_spill] sm:$0xff] %v2648_v23 }
  0x40   : > { %v732_v6 = vadd.f32 %v731_v42, %v3281_v59  ;;  %v840_v3 = vsel %vm566_vm0, %v502_v24, 0.0  ;;  %v3284_v47 = vunpack.c.h.bf16 %v2051_v35  ;;  %v3285_v25 = vunpack.c.h.bf16 %v2080_v50  ;;  %3330 = vst [vmem:[#allocation79_spill] sm:$0xff] %v2628_v38  ;;  %v2658_v50 = vld [vmem:[%s2033_s19 + $0x318] sm:$0xff] }
  0x41   : > { %v835_v62 = vadd.f32 %v3283_v52, %v3282_v45  ;;  %v3286_v17 = vunpack.c.h.bf16 %v2180_v14  ;;  %v887_v26 = vadd.f32 %v510_v21, %v506_v8  ;;  %v3287_v43 = vunpack.c.h.bf16 %v2113_v5  ;;  %3336 = vst [vmem:[#allocation85_spill] sm:$0xff] %v2658_v50  ;;  %v2665_v14 = vld [vmem:[%s2033_s19 + $0x328] sm:$0xff] }
  0x42   : > { %v577_v32 = vadd.f32 %v576_v57, %v3284_v47  ;;  %v629_v13 = vadd.f32 %v628_v63, %v3285_v25  ;;  %v3288_v59 = vunpack.c.h.bf16 %v2150_v28  ;;  %v3289_v45 = vunpack.c.h.bf16 %v2213_v9  ;;  %v2618_v28 = vld [vmem:[%s2033_s19 + $0x298] sm:$0x11]  ;;  %v2625_v9 = vld [vmem:[%s2033_s19 + $0x2a8] sm:$0xff]  ;;  %3337 = vst [vmem:[#allocation86_spill] sm:$0xff] %v2665_v14 }
  0x43   : > { %v784_v2 = vadd.f32 %v783_v39, %v3286_v17  ;;  %v681_v42 = vadd.f32 %v680_v20, %v3287_v43  ;;  %v892_v24 = vsel %vm566_vm0, %v530_v31, 0.0  ;;  %v3290_v47 = vunpack.c.h.bf16 %v2054_v36  ;;  %3328 = vst [vmem:[#allocation77_spill] sm:$0xff] %v2618_v28  ;;  %3329 = vst [vmem:[#allocation78_spill] sm:$0xff] %v2625_v9 }
  0x44   : > { %v733_v55 = vadd.f32 %v732_v6, %v3288_v59  ;;  %v836_v52 = vadd.f32 %v835_v62, %v3289_v45  ;;  %v3291_v63 = vunpack.c.h.bf16 %v2083_v51  ;;  %v3292_v39 = vunpack.c.h.bf16 %v2183_v0  ;;  %v2608_v0 = vld [vmem:[%s2033_s19 + $0x278] sm:$0xff] }
  0x45   : > { %v578_v57 = vadd.f32 %v577_v32, %v3290_v47  ;;  %v888_v21 = vadd.f32 %v887_v26, %v514_v15  ;;  %v3293_v20 = vunpack.c.h.bf16 %v2120_v10  ;;  %v3294_v6 = vunpack.c.h.bf16 %v2153_v29  ;;  %v2598_v29 = vld [vmem:[%s2033_s19 + $0x258] sm:$0xff]  ;;  %3326 = vst [vmem:[#allocation75_spill] sm:$0xff] %v2608_v0  ;;  %v2655_v10 = vld [vmem:[%s2033_s19 + $0x308] sm:$0x11] }
  0x46   : > { %v630_v25 = vadd.f32 %v629_v13, %v3291_v63  ;;  %v785_v8 = vadd.f32 %v784_v2, %v3292_v39  ;;  %v3295_v62 = vunpack.c.h.bf16 %v2220_v27  ;;  %v939_v31 = vadd.f32 %v538_v41, %v534_v60  ;;  %v2638_v51 = vld [vmem:[%s2033_s19 + $0x2d8] sm:$0xff]  ;;  %3335 = vst [vmem:[#allocation84_spill] sm:$0xff] %v2655_v10 }
  0x47   : > { %v682_v17 = vadd.f32 %v681_v42, %v3293_v20  ;;  %v734_v43 = vadd.f32 %v733_v55, %v3294_v6  ;;  %v3296_v45 = vunpack.c.h.bf16 %v2057_v37  ;;  %v3297_v47 = vunpack.c.h.bf16 %v2090_v56  ;;  %3332 = vst [vmem:[#allocation81_spill] sm:$0xff] %v2638_v51  ;;  %v2645_v56 = vld [vmem:[%s2033_s19 + $0x2e8] sm:$0xff] }
  0x48   : > { %v837_v59 = vadd.f32 %v836_v52, %v3295_v62  ;;  %v3298_v63 = vunpack.c.h.bf16 %v2190_v58  ;;  %v889_v15 = vadd.f32 %v888_v21, %v518_v30  ;;  %v3299_v26 = vunpack.c.h.bf16 %v2123_v11  ;;  %v3305_v21 = vld [vmem:[#allocation45_spill] sm:$0xff]  ;;  %v2588_v58 = vld [vmem:[%s2033_s19 + $0x238] sm:$0xff]  ;;  %v2635_v11 = vld [vmem:[%s2033_s19 + $0x2c8] sm:$0xff]  ;;  %3333 = vst [vmem:[#allocation82_spill] sm:$0xff] %v2645_v56 }
  0x49   : > { %v579_v32 = vadd.f32 %v578_v57, %v3296_v45  ;;  %v631_v13 = vadd.f32 %v630_v25, %v3297_v47  ;;  %v3300_v39 = vunpack.c.h.bf16 %v2160_v54  ;;  %v3301_v20 = vunpack.c.h.bf16 %v2223_v7  ;;  %v3303_v25 = vld [vmem:[#allocation51_spill] sm:$0xff]  ;;  %v3307_v7 = vld [vmem:[#allocation52_spill] sm:$0xff]  ;;  %3324 = vst [vmem:[#allocation73_spill] sm:$0xff] %v2588_v58  ;;  %3331 = vst [vmem:[#allocation80_spill] sm:$0xff] %v2635_v11 }
  0x4a   : > { %v786_v2 = vadd.f32 %v785_v8, %v3298_v63  ;;  %v683_v42 = vadd.f32 %v682_v17, %v3299_v26  ;;  %v940_v41 = vadd.f32 %v939_v31, %v542_v18  ;;  %v3302_v57 = vunpack.c.h.bf16 %v2193_v40  ;;  %v2578_v40 = vld [vmem:[%s2033_s19 + $0x218] sm:$0xff]  ;;  %v2615_v54 = vld [vmem:[%s2033_s19 + $0x288] sm:$0xff] }
  0x4b   : > { %v735_v55 = vadd.f32 %v734_v43, %v3300_v39  ;;  %v838_v52 = vadd.f32 %v837_v59, %v3301_v20  ;;  %v581_v60 = vadd.f32 %v580_v61, %v579_v32  ;;  %v633_v6 = vadd.f32 %v632_v12, %v631_v13  ;;  %3327 = vst [vmem:[#allocation76_spill] sm:$0xff] %v2615_v54 }
  0x4c   : > { %v787_v62 = vadd.f32 %v786_v2, %v3302_v57  ;;  %v3304_v45 = vunpack.c.h.bf16 %v3303_v25  ;;  %v685_v8 = vadd.f32 %v684_v19, %v683_v42  ;;  %v3306_v63 = vunpack.c.h.bf16 %v3305_v21  ;;  %v2568_v25 = vld [vmem:[%s2033_s19 + $0x1f8] sm:$0xff]  ;;  %v2605_v21 = vld [vmem:[%s2033_s19 + $0x268] sm:$0xff] }
  0x4d   : > { %v737_v30 = vadd.f32 %v736_v1, %v735_v55  ;;  %v941_v26 = vadd.f32 %v940_v41, %v546_v53  ;;  %v582_v27 = vrot.slane %v581_v60, 4  ;;  %v634_v43 = vrot.slane %v633_v6, 4  ;;  %3325 = vst [vmem:[#allocation74_spill] sm:$0xff] %v2605_v21 }
  0x4e   : > { %v890_v47 = vadd.f32 %v889_v15, %v3304_v45  ;;  %v839_v17 = vadd.f32 %v838_v52, %v3306_v63  ;;  %v789_v39 = vadd.f32 %v788_v22, %v787_v62  ;;  %v3308_v59 = vunpack.c.h.bf16 %v3307_v7  ;;  %v3310_v63 = vld [vmem:[#allocation60_spill] sm:$0xff] }
  0x4f   : > { %v686_v61 = vrot.slane %v685_v8, 4  ;;  %v738_v12 = vrot.slane %v737_v30, 4  ;;  %v942_v32 = vadd.f32 %v941_v26, %v550_v46  ;;  %v583_v13 = vadd.f32 %v582_v27, %v581_v60  ;;  %v2595_v7 = vld [vmem:[%s2033_s19 + $0x248] sm:$0xff] }
  0x50   : > { %v891_v18 = vadd.f32 %v890_v47, %v3308_v59  ;;  %v841_v31 = vadd.f32 %v840_v3, %v839_v17  ;;  %v635_v2 = vadd.f32 %v634_v43, %v633_v6  ;;  %v790_v20 = vrot.slane %v789_v39, 4 }
  0x51   : > { %v687_v19 = vadd.f32 %v686_v61, %v685_v8  ;;  %v739_v1 = vadd.f32 %v738_v12, %v737_v30  ;;  %v3309_v55 = vunpack.c.h.bf16 %v2300_v48  ;;  %v584_v52 = vrot.slane %v583_v13, 2  ;;  %v2558_v48 = vld [vmem:[%s2033_s19 + $0x1d8] sm:$0xff] }
  0x52   : > { %v893_v15 = vadd.f32 %v892_v24, %v891_v18  ;;  %v842_v42 = vrot.slane %v841_v31, 4  ;;  %v636_v41 = vrot.slane %v635_v2, 2  ;;  %v791_v22 = vadd.f32 %v790_v20, %v789_v39  ;;  %3322 = vst [vmem:[#allocation71_spill] sm:$0xff] %v2558_v48 }
  0x53   : > { %v943_v53 = vadd.f32 %v942_v32, %v3309_v55  ;;  %v688_v62 = vrot.slane %v687_v19, 2  ;;  %v740_v45 = vrot.slane %v739_v1, 2  ;;  %v3311_v3 = vunpack.c.h.bf16 %v3310_v63  ;;  %v2585_v63 = vld [vmem:[%s2033_s19 + $0x228] sm:$0x11] }
  0x54   : > { %v894_v57 = vrot.slane %v893_v15, 4  ;;  %v843_v47 = vadd.f32 %v842_v42, %v841_v31  ;;  %v585_v27 = vadd.f32 %v584_v52, %v583_v13  ;;  %v637_v60 = vadd.f32 %v636_v41, %v635_v2  ;;  %3323 = vst [vmem:[#allocation72_spill] sm:$0xff] %v2585_v63 }
  0x55   : > { %v944_v46 = vsel %vm566_vm0, %v3311_v3, 0.0  ;;  %v792_v24 = vrot.slane %v791_v22, 2  ;;  %v689_v8 = vadd.f32 %v688_v62, %v687_v19  ;;  %v741_v30 = vadd.f32 %v740_v45, %v739_v1 }
  0x56   : > { %v895_v6 = vadd.f32 %v894_v57, %v893_v15  ;;  %v844_v17 = vrot.slane %v843_v47, 2  ;;  %v945_v26 = vadd.f32 %v944_v46, %v943_v53  ;;  %v586_v43 = vrot.slane %v585_v27, 1 }
  0x57   : > { %v638_v59 = vrot.slane %v637_v60, 1  ;;  %v793_v39 = vadd.f32 %v792_v24, %v791_v22  ;;  %v690_v61 = vrot.slane %v689_v8, 1  ;;  %v742_v12 = vrot.slane %v741_v30, 1 }
  0x58   : > { %v896_v18 = vrot.slane %v895_v6, 2  ;;  %v845_v31 = vadd.f32 %v844_v17, %v843_v47  ;;  %v946_v32 = vrot.slane %v945_v26, 4  ;;  %v587_v20 = vadd.f32 %v586_v43, %v585_v27  ;;  %v2420_v17 = vld [vmem:[%s2033_s19 + $0x8] sm:$0xff] }
  0x59   : > { %v639_v13 = vadd.f32 %v638_v59, %v637_v60  ;;  %v794_v2 = vrot.slane %v793_v39, 1  ;;  %v691_v15 = vadd.f32 %v690_v61, %v689_v8  ;;  %v743_v19 = vadd.f32 %v742_v12, %v741_v30  ;;  %3312 = vst [vmem:[#allocation61_spill] sm:$0xff] %v2420_v17 }
  0x5a   : > { %v897_v42 = vadd.f32 %v896_v18, %v895_v6  ;;  %v846_v1 = vrot.slane %v845_v31, 1  ;;  %v947_v55 = vadd.f32 %v946_v32, %v945_v26  ;;  %v979_v41 = vmul.f32 0.020408163, %v587_v20  ;;  %v2423_v32 = vld [vmem:[%s2033_s19 + $0x18] sm:$0xff] }
  0x5b   : > { %v795_v53 = vadd.f32 %v794_v2, %v793_v39  ;;  %v983_v22 = vmul.f32 0.020408163, %v639_v13  ;;  %v987_v45 = vmul.f32 0.020408163, %v691_v15  ;;  %v991_v47 = vmul.f32 0.020408163, %v743_v19 }
  0x5c   : > { %v898_v52 = vrot.slane %v897_v42, 1  ;;  %v847_v57 = vadd.f32 %v846_v1, %v845_v31  ;;  %v948_v62 = vrot.slane %v947_v55, 2  ;;  %v1011_v27 = vpack.c.bf16 %v979_v41, %v979_v41  ;;  %v2500_v15 = vld [vmem:[%s2033_s19 + $0x118] sm:$0xff] }
  0x5d   : > { %v995_v46 = vmul.f32 0.020408163, %v795_v53  ;;  %v1015_v60 = vpack.c.bf16 %v983_v22, %v983_v22  ;;  %v1019_v8 = vpack.c.bf16 %v987_v45, %v987_v45  ;;  %v1023_v30 = vpack.c.bf16 %v991_v47, %v991_v47  ;;  %v2432_v53 = vld [vmem:[%s2033_s19 + $0x38] sm:$0xff]  ;;  %v2575_v47 = vld [vmem:[%s2033_s19 + $0x208] sm:$0xff] }
  0x5e   : > { %v899_v3 = vadd.f32 %v898_v52, %v897_v42  ;;  %v949_v24 = vadd.f32 %v948_v62, %v947_v55  ;;  %v999_v6 = vmul.f32 0.020408163, %v847_v57  ;;  %v1139_v59 = vunpack.c.l.b16 %v1011_v27  ;;  %v2427_v42 = vld [vmem:[%s2033_s19 + $0x28] sm:$0xff]  ;;  %v2440_v62 = vld [vmem:[%s2033_s19 + $0x58] sm:$0xff] }
  0x5f   : > { %v1027_v43 = vpack.c.bf16 %v995_v46, %v995_v46  ;;  %v1143_v39 = vunpack.c.l.b16 %v1015_v60  ;;  %v1147_v12 = vunpack.c.l.b16 %v1019_v8  ;;  %v1151_v31 = vunpack.c.l.b16 %v1023_v30  ;;  %v2435_v52 = vld [vmem:[%s2033_s19 + $0x48] sm:$0xff]  ;;  %v2449_v60 = vld [vmem:[%s2033_s19 + $0x78] sm:$0xff] }
  0x60   : > { %v1003_v26 = vmul.f32 0.020408163, %v899_v3  ;;  %v950_v18 = vrot.slane %v949_v24, 1  ;;  %v1031_v61 = vpack.c.bf16 %v999_v6, %v999_v6  ;;  %v2446_v27 = vld [vmem:[%s2033_s19 + $0x68] sm:$0x11]  ;;  %3314 = vst [vmem:[#allocation63_spill] sm:$0xff] %v2449_v60  ;;  %v504_v5 = vunpack.c.h.bf16 %v2618_v28 }
  0x61   : > { %v1155_v13 = vunpack.c.l.b16 %v1027_v43  ;;  %v1184_v2 = vsel %vm1170_vm1, %v1143_v39, %v1139_v59  ;;  %3313 = vst [vmem:[#allocation62_spill] sm:$0xff] %v2446_v27  ;;  %v2455_v30 = vld [vmem:[%s2033_s19 + $0x88] sm:$0xff]  ;;  %v2518_v6 = vld [vmem:[%s2033_s19 + $0x158] sm:$0xff]  ;;  %v508_v37 = vunpack.c.h.bf16 %v2625_v9  ;;  %v512_v36 = vunpack.c.h.bf16 %v2628_v38 }
  0x62   : > { %v1035_v20 = vpack.c.bf16 %v1003_v26, %v1003_v26  ;;  %v951_v19 = vadd.f32 %v950_v18, %v949_v24  ;;  %v1159_v1 = vunpack.c.l.b16 %v1031_v61  ;;  %v1185_v55 = vsel %vm1172_vm2, %v1147_v12, %v1184_v2  ;;  %v2462_v61 = vld [vmem:[%s2033_s19 + $0x98] sm:$0xff]  ;;  %v2465_v12 = vld [vmem:[%s2033_s19 + $0xa8] sm:$0xff]  ;;  %3318 = vst [vmem:[#allocation67_spill] sm:$0xff] %v2518_v6 }
  0x63   : > { %v1186_v57 = vsel %vm1174_vm3, %v1151_v31, %v1185_v55  ;;  %v2473_v2 = vld [vmem:[%s2033_s19 + $0xc8] sm:$0xff]  ;;  %v2489_v26 = vld [vmem:[%s2033_s19 + $0xf8] sm:$0xff]  ;;  %v516_v28 = vunpack.c.h.bf16 %v2635_v11  ;;  %v536_v33 = vunpack.c.h.bf16 %v2658_v50  ;;  %v540_v38 = vunpack.c.h.bf16 %v2665_v14 }
  0x64   : > { %v1163_v22 = vunpack.c.l.b16 %v1035_v20  ;;  %v1007_v3 = vmul.f32 0.020408163, %v951_v19  ;;  %v1187_v46 = vsel %vm1176_vm4, %v1155_v13, %v1186_v57  ;;  %v2470_v13 = vld [vmem:[%s2033_s19 + $0xb8] sm:$0xff]  ;;  %v2486_v59 = vld [vmem:[%s2033_s19 + $0xe8] sm:$0xff]  ;;  %3317 = vst [vmem:[#allocation66_spill] sm:$0xff] %v2489_v26  ;;  %v544_v44 = vunpack.c.h.bf16 %v2668_v4 }
  0x65   : > { %v1188_v8 = vsel %vm1178_vm5, %v1159_v1, %v1187_v46  ;;  %3316 = vst [vmem:[#allocation65_spill] sm:$0xff] %v2486_v59  ;;  %v2515_v19 = vld [vmem:[%s2033_s19 + $0x148] sm:$0x11]  ;;  %v2538_v1 = vld [vmem:[%s2033_s19 + $0x198] sm:$0xff]  ;;  %v548_v54 = vunpack.c.h.bf16 %v2675_v49  ;;  %v3342_v35 = vunpack.c.h.bf16 %v2420_v17  ;;  %v3343_v4 = vunpack.c.h.bf16 %v2423_v32 }
  0x66   : > { %v1039_v39 = vpack.c.bf16 %v1007_v3, %v1007_v3  ;;  %v1189_v18 = vsel %vm1180_vm6, %v1163_v22, %v1188_v8  ;;  %v2480_v3 = vld [vmem:[%s2033_s19 + $0xd8] sm:$0x11]  ;;  %v2497_v8 = vld [vmem:[%s2033_s19 + $0x108] sm:$0xff]  ;;  %v3344_v23 = vunpack.c.h.bf16 %v2446_v27  ;;  %v3345_v16 = vunpack.c.h.bf16 %v2449_v60 }
  0x67   : > { %3315 = vst [vmem:[#allocation64_spill] sm:$0xff] %v2480_v3  ;;  %v2506_v22 = vld [vmem:[%s2033_s19 + $0x128] sm:$0xff]  ;;  %v2548_v41 = vld [vmem:[%s2033_s19 + $0x1b8] sm:$0x11]  ;;  %v601_v56 = vadd.f32 %v3343_v4, %v3342_v35  ;;  %v3347_v50 = vunpack.c.h.bf16 %v2480_v3  ;;  %v3348_v14 = vunpack.c.h.bf16 %v2486_v59  ;;  %v3349_v17 = vunpack.c.h.bf16 %v2489_v26 }
  0x68   : > { %v1167_v57 = vunpack.c.l.b16 %v1039_v39  ;;  %v2509_v39 = vld [vmem:[%s2033_s19 + $0x138] sm:$0xff]  ;;  %v2525_v20 = vld [vmem:[%s2033_s19 + $0x168] sm:$0xff]  ;;  %3320 = vst [vmem:[#allocation69_spill] sm:$0xff] %v2548_v41  ;;  %v606_v49 = vsel %vm566_vm0, %v3344_v23, 0.0  ;;  %v3350_v35 = vunpack.c.h.bf16 %v2515_v19  ;;  %v3351_v23 = vunpack.c.h.bf16 %v2518_v6 }
  0x69   : > { %3319 = vst [vmem:[#allocation68_spill] sm:$0xff] %v2525_v20  ;;  %v2535_v55 = vld [vmem:[%s2033_s19 + $0x188] sm:$0xff]  ;;  %v2678_v9 = vld [vmem:[%s2033_s19 + $0x358] sm:$0xff]  ;;  %v3352_v60 = vunpack.c.h.bf16 %v2525_v20  ;;  %v3355_v59 = vunpack.c.h.bf16 %v2462_v61  ;;  %v3358_v6 = vunpack.c.h.bf16 %v2585_v63 }
  0x6a   : > { %v1190_v45 = vsel %vm1182_vm7, %v1167_v57, %v1189_v18  ;;  %v2528_v18 = vld [vmem:[%s2033_s19 + $0x178] sm:$0xff]  ;;  %v2545_v46 = vld [vmem:[%s2033_s19 + $0x1a8] sm:$0xff]  ;;  %3340 = vst [vmem:[#allocation89_spill] sm:$0xff] %v2678_v9  ;;  %v658_v57 = vsel %vm566_vm0, %v3347_v50, 0.0  ;;  %v710_v4 = vsel %vm566_vm0, %v3350_v35, 0.0  ;;  %v3354_v50 = vunpack.c.h.bf16 %v2427_v42 }
  0x6b   : > { %v1206_v43 = vpack.c.b16 %v1190_v45, %v1190_v45  ;;  %v2555_v24 = vld [vmem:[%s2033_s19 + $0x1c8] sm:$0xff]  ;;  %v2688_v31 = vld [vmem:[%s2033_s19 + $0x378] sm:$0x11]  ;;  %v757_v27 = vadd.f32 %v3352_v60, %v3351_v23  ;;  %v814_v20 = vsel %vm566_vm0, %v3358_v6, 0.0  ;;  %v3359_v60 = vunpack.c.h.bf16 %v2497_v8 }
  0x6c   : > { %3321 = vst [vmem:[#allocation70_spill] sm:$0xff] %v2555_v24  ;;  %v2565_v45 = vld [vmem:[%s2033_s19 + $0x1e8] sm:$0xff]  ;;  %3341 = vst [vmem:[#allocation90_spill] sm:$0xff] %v2688_v31  ;;  %v705_v31 = vadd.f32 %v3349_v17, %v3348_v14  ;;  %v602_v3 = vadd.f32 %v601_v56, %v3354_v50  ;;  %v3356_v14 = vunpack.c.h.bf16 %v2555_v24  ;;  %v3357_v17 = vunpack.c.h.bf16 %v2558_v48  ;;  %s1863_s19 = smov [#allocation2]  }
  0x6d   : > { %1437 = vmatprep.mubr.bf16.mxu0 %v1206_v43  ;;  %v520_v43 = vunpack.c.h.bf16 %v2638_v51  ;;  %v532_v51 = vunpack.c.h.bf16 %v2655_v10  ;;  %v552_v10 = vunpack.c.h.bf16 %v2678_v9  ;;  %v3346_v9 = vunpack.c.h.bf16 %v2455_v30  ;;  %s1789_s21 = sshll.u32 %s1863_s19, 4  ;;  %s1790_s21 = int_to_ptr.vmem [resolvable:$false] %s1789_s21 }
  0x6e   : > { %v809_v35 = vadd.f32 %v3357_v17, %v3356_v14  ;;  %v706_v23 = vadd.f32 %v705_v31, %v3359_v60  ;;  %v3361_v56 = vunpack.c.h.bf16 %v2588_v58  ;;  %v3362_v50 = vunpack.c.h.bf16 %v2595_v7  ;;  %s1791_s15 = scalar_lea.vmem %s1790_s21, 256  ;;  %p1792_p1 = scmp.lt.s32.totalorder %s1520_s7, %s1790_s21 }
  0x6f   : > { %v653_v11 = vadd.f32 %v3346_v9, %v3345_v16  ;;  %v3353_v9 = vunpack.c.h.bf16 %v2548_v41  ;;  %v3363_v48 = vunpack.c.h.bf16 %v2432_v53  ;;  %v3364_v17 = vunpack.c.h.bf16 %v2465_v12  ;;  %p1793_p2 = scmp.lt.s32.totalorder %s1791_s15, %s1785_s11 }
  0x70   : > { %v3365_v6 = vunpack.c.h.bf16 %v2565_v45  ;;  %v913_v31 = vadd.f32 %v512_v36, %v508_v37  ;;  %v3366_v60 = vunpack.c.h.bf16 %v2500_v15 }
  0x71   : > { %v762_v16 = vsel %vm566_vm0, %v3353_v9, 0.0  ;;  %v654_v26 = vadd.f32 %v653_v11, %v3355_v59  ;;  %v3360_v9 = vunpack.c.h.bf16 %v2528_v18  ;;  %v861_v11 = vadd.f32 %v3362_v50, %v3361_v56  ;;  %p1794_p3 = por %p1793_p2, %p1792_p1 }
  0x72   : > { %v866_v59 = vsel %vm566_vm0, %v504_v5, 0.0  ;;  %v603_v14 = vadd.f32 %v602_v3, %v3363_v48  ;;  %v810_v24 = vadd.f32 %v809_v35, %v3365_v6  ;;  %v3368_v56 = vunpack.c.h.bf16 %v2598_v29 }
  0x73   : > { %v758_v41 = vadd.f32 %v757_v27, %v3360_v9  ;;  %v655_v63 = vadd.f32 %v654_v26, %v3364_v17  ;;  %v707_v27 = vadd.f32 %v706_v23, %v3366_v60  ;;  %v3367_v9 = vunpack.c.h.bf16 %v2535_v55  ;;  %p1795_p5 = pnand %p1794_p3, %p1788_p0 }
  0x74   : > { %v862_v50 = vadd.f32 %v861_v11, %v3368_v56  ;;  %v918_v5 = vsel %vm566_vm0, %v532_v51, 0.0  ;;  %v3369_v48 = vunpack.c.h.bf16 %v2435_v52  ;;  %v3370_v26 = vunpack.c.h.bf16 %v2470_v13 }
  0x75   : > { %v759_v58 = vadd.f32 %v758_v41, %v3367_v9  ;;  %v3371_v35 = vunpack.c.h.bf16 %v2568_v25  ;;  %v914_v37 = vadd.f32 %v913_v31, %v516_v28  ;;  %v3372_v23 = vunpack.c.h.bf16 %v2506_v22 }
  0x76   : > { %v604_v3 = vadd.f32 %v603_v14, %v3369_v48  ;;  %v656_v17 = vadd.f32 %v655_v63, %v3370_v26  ;;  %v3373_v41 = vunpack.c.h.bf16 %v2538_v1  ;;  %v3374_v11 = vunpack.c.h.bf16 %v2605_v21 }
  0x77   : > { %v811_v36 = vadd.f32 %v810_v24, %v3371_v35  ;;  %v708_v6 = vadd.f32 %v707_v27, %v3372_v23  ;;  %v965_v51 = vadd.f32 %v540_v38, %v536_v33  ;;  %v3375_v56 = vunpack.c.h.bf16 %v2440_v62 }
  0x78   : > { %v760_v60 = vadd.f32 %v759_v58, %v3373_v41  ;;  %v863_v9 = vadd.f32 %v862_v50, %v3374_v11  ;;  %v3376_v48 = vunpack.c.h.bf16 %v2473_v2  ;;  %v3377_v26 = vunpack.c.h.bf16 %v2575_v47 }
  0x79   : > { %v605_v14 = vadd.f32 %v604_v3, %v3375_v56  ;;  %v915_v28 = vadd.f32 %v914_v37, %v520_v43  ;;  %v3378_v31 = vunpack.c.h.bf16 %v2509_v39  ;;  %v3379_v35 = vunpack.c.h.bf16 %v2545_v46  ;;  %v3384_v37 = vld [vmem:[#allocation76_spill] sm:$0xff] }
  0x7a   : > { %v657_v63 = vadd.f32 %v656_v17, %v3376_v48  ;;  %v812_v24 = vadd.f32 %v811_v36, %v3377_v26  ;;  %v3380_v23 = vunpack.c.h.bf16 %v2608_v0  ;;  %v966_v33 = vadd.f32 %v965_v51, %v544_v44  ;;  %v3382_v17 = vld [vmem:[#allocation82_spill] sm:$0xff]  ;;  %v3386_v0 = vld [vmem:[#allocation83_spill] sm:$0xff] }
  0x7b   : > { %v709_v27 = vadd.f32 %v708_v6, %v3378_v31  ;;  %v761_v58 = vadd.f32 %v760_v60, %v3379_v35  ;;  %v607_v38 = vadd.f32 %v606_v49, %v605_v14  ;;  %v3381_v3 = vunpack.c.h.bf16 %v2578_v40 }
  0x7c   : > { %v864_v50 = vadd.f32 %v863_v9, %v3380_v23  ;;  %v659_v41 = vadd.f32 %v658_v57, %v657_v63  ;;  %v3383_v56 = vunpack.c.h.bf16 %v3382_v17  ;;  %v3385_v26 = vunpack.c.h.bf16 %v3384_v37 }
  0x7d   : > { %v813_v11 = vadd.f32 %v812_v24, %v3381_v3  ;;  %v711_v36 = vadd.f32 %v710_v4, %v709_v27  ;;  %v763_v43 = vadd.f32 %v762_v16, %v761_v58  ;;  %v967_v31 = vadd.f32 %v966_v33, %v548_v54 }
  0x7e   : > { %v916_v48 = vadd.f32 %v915_v28, %v3383_v56  ;;  %v865_v6 = vadd.f32 %v864_v50, %v3385_v26  ;;  %v608_v21 = vrot.slane %v607_v38, 4  ;;  %v660_v60 = vrot.slane %v659_v41, 4  ;;  %v3389_v26 = vld [vmem:[#allocation90_spill] sm:$0xff] }
  0x7f   : > { %v815_v35 = vadd.f32 %v814_v20, %v813_v11  ;;  %v3387_v9 = vunpack.c.h.bf16 %v3386_v0  ;;  %v712_v49 = vrot.slane %v711_v36, 4  ;;  %v764_v57 = vrot.slane %v763_v43, 4 }
  0x80   : > { %v867_v51 = vadd.f32 %v866_v59, %v865_v6  ;;  %v968_v14 = vadd.f32 %v967_v31, %v552_v10  ;;  %v609_v63 = vadd.f32 %v608_v21, %v607_v38  ;;  %v661_v24 = vadd.f32 %v660_v60, %v659_v41 }
  0x81   : > { %v917_v44 = vadd.f32 %v916_v48, %v3387_v9  ;;  %v816_v23 = vrot.slane %v815_v35, 4  ;;  %v713_v4 = vadd.f32 %v712_v49, %v711_v36  ;;  %v765_v16 = vadd.f32 %v764_v57, %v763_v43 }
  0x82   : > { %v868_v27 = vrot.slane %v867_v51, 4  ;;  %v3388_v58 = vunpack.c.h.bf16 %v2685_v34  ;;  %v610_v50 = vrot.slane %v609_v63, 2  ;;  %v662_v33 = vrot.slane %v661_v24, 2 }
  0x83   : > { %v919_v28 = vadd.f32 %v918_v5, %v917_v44  ;;  %v817_v20 = vadd.f32 %v816_v23, %v815_v35  ;;  %v714_v11 = vrot.slane %v713_v4, 2  ;;  %v766_v56 = vrot.slane %v765_v16, 2 }
  0x84   : > { %v969_v54 = vadd.f32 %v968_v14, %v3388_v58  ;;  %v869_v48 = vadd.f32 %v868_v27, %v867_v51  ;;  %v3390_v59 = vunpack.c.h.bf16 %v3389_v26  ;;  %v611_v21 = vadd.f32 %v610_v50, %v609_v63 }
  0x85   : > { %v920_v3 = vrot.slane %v919_v28, 4  ;;  %v663_v38 = vadd.f32 %v662_v33, %v661_v24  ;;  %v818_v5 = vrot.slane %v817_v20, 2  ;;  %v715_v36 = vadd.f32 %v714_v11, %v713_v4 }
  0x86   : > { %v970_v10 = vsel %vm566_vm0, %v3390_v59, 0.0  ;;  %v767_v43 = vadd.f32 %v766_v56, %v765_v16  ;;  %v870_v6 = vrot.slane %v869_v48, 2  ;;  %v612_v60 = vrot.slane %v611_v21, 1 }
  0x87   : > { %v921_v41 = vadd.f32 %v920_v3, %v919_v28  ;;  %v971_v31 = vadd.f32 %v970_v10, %v969_v54  ;;  %v664_v9 = vrot.slane %v663_v38, 1  ;;  %v819_v44 = vadd.f32 %v818_v5, %v817_v20 }
  0x88   : > { %v716_v49 = vrot.slane %v715_v36, 1  ;;  %v768_v57 = vrot.slane %v767_v43, 1  ;;  %v871_v14 = vadd.f32 %v870_v6, %v869_v48  ;;  %v613_v23 = vadd.f32 %v612_v60, %v611_v21 }
  0x89   : > { %v922_v35 = vrot.slane %v921_v41, 2  ;;  %v972_v51 = vrot.slane %v971_v31, 4  ;;  %v665_v27 = vadd.f32 %v664_v9, %v663_v38  ;;  %v820_v58 = vrot.slane %v819_v44, 1 }
  0x8a   : > { %v717_v63 = vadd.f32 %v716_v49, %v715_v36  ;;  %v769_v24 = vadd.f32 %v768_v57, %v767_v43  ;;  %v872_v50 = vrot.slane %v871_v14, 1  ;;  %v981_v33 = vmul.f32 0.020408163, %v613_v23 }
  0x8b   : > { %v923_v59 = vadd.f32 %v922_v35, %v921_v41  ;;  %v973_v28 = vadd.f32 %v972_v51, %v971_v31  ;;  %v821_v4 = vadd.f32 %v820_v58, %v819_v44  ;;  %v985_v54 = vmul.f32 0.020408163, %v665_v27  ;;  %v3391_v27 = vld [vmem:[#allocation5_spill] sm:$0xff] }
  0x8c   : > { %v873_v3 = vadd.f32 %v872_v50, %v871_v14  ;;  %v989_v20 = vmul.f32 0.020408163, %v717_v63  ;;  %v993_v56 = vmul.f32 0.020408163, %v769_v24  ;;  %v1013_v48 = vpack.c.bf16 %v981_v33, %v981_v33 }
  0x8d   : > { %v924_v16 = vrot.slane %v923_v59, 1  ;;  %v974_v11 = vrot.slane %v973_v28, 2  ;;  %v997_v5 = vmul.f32 0.020408163, %v821_v4  ;;  %v1017_v6 = vpack.c.bf16 %v985_v54, %v985_v54 }
  0x8e   : > { %v1001_v38 = vmul.f32 0.020408163, %v873_v3  ;;  %v1021_v60 = vpack.c.bf16 %v989_v20, %v989_v20  ;;  %v1025_v41 = vpack.c.bf16 %v993_v56, %v993_v56  ;;  %v1141_v9 = vunpack.c.l.b16 %v1013_v48  ;;  %v3397_v20 = vld [vmem:[#allocation7_spill] sm:$0xff] }
  0x8f   : > { %v925_v10 = vadd.f32 %v924_v16, %v923_v59  ;;  %v975_v21 = vadd.f32 %v974_v11, %v973_v28  ;;  %v1029_v43 = vpack.c.bf16 %v997_v5, %v997_v5  ;;  %v1145_v31 = vunpack.c.l.b16 %v1017_v6  ;;  %v3393_v59 = vld [vmem:[#allocation6_spill] sm:$0xff]  ;;  %v3395_v16 = vld [vmem:[#allocation11_spill] sm:$0xff]  ;;  %v3399_v5 = vld [vmem:[#allocation12_spill] sm:$0xff] }
  0x90   : > { %v1033_v35 = vpack.c.bf16 %v1001_v38, %v1001_v38  ;;  %v1149_v49 = vunpack.c.l.b16 %v1021_v60  ;;  %v1153_v57 = vunpack.c.l.b16 %v1025_v41  ;;  %v3392_v58 = vunpack.c.l.bf16 %v3391_v27  ;;  %v3401_v6 = vld [vmem:[#allocation13_spill] sm:$0xff] }
  0x91   : > { %v1005_v36 = vmul.f32 0.020408163, %v925_v10  ;;  %v976_v44 = vrot.slane %v975_v21, 1  ;;  %v1157_v51 = vunpack.c.l.b16 %v1029_v43  ;;  %v1198_v23 = vsel %vm1170_vm1, %v1145_v31, %v1141_v9  ;;  %v3405_v31 = vld [vmem:[#allocation19_spill] sm:$0xff] }
  0x92   : > { %v3394_v63 = vunpack.c.l.bf16 %v3393_v59  ;;  %v1161_v28 = vunpack.c.l.b16 %v1033_v35  ;;  %v1199_v4 = vsel %vm1172_vm2, %v1149_v49, %v1198_v23  ;;  %v3396_v33 = vunpack.c.l.bf16 %v3395_v16  ;;  %v3407_v35 = vld [vmem:[#allocation20_spill] sm:$0xff]  ;;  %v3411_v59 = vld [vmem:[#allocation14_spill] sm:$0xff] }
  0x93   : > { %v1037_v14 = vpack.c.bf16 %v1005_v36, %v1005_v36  ;;  %v977_v50 = vadd.f32 %v976_v44, %v975_v21  ;;  %v1200_v11 = vsel %vm1174_vm3, %v1153_v57, %v1199_v4  ;;  %v3398_v56 = vunpack.c.l.bf16 %v3397_v20  ;;  %v3403_v36 = vld [vmem:[#allocation18_spill] sm:$0xff]  ;;  %v3409_v23 = vld [vmem:[#allocation8_spill] sm:$0xff] }
  0x94   : > { %v561_v24 = vadd.f32 %v3394_v63, %v3392_v58  ;;  %v567_v54 = vsel %vm566_vm0, %v3396_v33, 0.0  ;;  %v3400_v48 = vunpack.c.l.bf16 %v3399_v5  ;;  %v3402_v38 = vunpack.c.l.bf16 %v3401_v6  ;;  %v3417_v5 = vld [vmem:[#allocation26_spill] sm:$0xff]  ;;  %v3419_v6 = vld [vmem:[#allocation27_spill] sm:$0xff] }
  0x95   : > { %v1165_v3 = vunpack.c.l.b16 %v1037_v14  ;;  %v1009_v41 = vmul.f32 0.020408163, %v977_v50  ;;  %v1201_v21 = vsel %vm1176_vm4, %v1157_v51, %v1200_v11  ;;  %v3404_v43 = vunpack.c.l.bf16 %v3403_v36  ;;  %v3413_v50 = vld [vmem:[#allocation25_spill] sm:$0xff] }
  0x96   : > { %v562_v10 = vadd.f32 %v561_v24, %v3398_v56  ;;  %v614_v60 = vadd.f32 %v3402_v38, %v3400_v48  ;;  %v3406_v44 = vunpack.c.l.bf16 %v3405_v31  ;;  %v3408_v49 = vunpack.c.l.bf16 %v3407_v35  ;;  %v3415_v11 = vld [vmem:[#allocation21_spill] sm:$0xff] }
  0x97   : > { %v619_v9 = vsel %vm566_vm0, %v3404_v43, 0.0  ;;  %v1202_v14 = vsel %vm1178_vm5, %v1161_v28, %v1201_v21  ;;  %v3410_v27 = vunpack.c.l.bf16 %v3409_v23  ;;  %v3412_v63 = vunpack.c.l.bf16 %v3411_v59  ;;  %v3421_v21 = vld [vmem:[#allocation9_spill] sm:$0xff]  ;;  %v3423_v43 = vld [vmem:[#allocation15_spill] sm:$0xff]  ;;  %v3431_v59 = vld [vmem:[#allocation22_spill] sm:$0xff] }
  0x98   : > { %v666_v57 = vadd.f32 %v3408_v49, %v3406_v44  ;;  %v3414_v4 = vunpack.c.l.bf16 %v3413_v50  ;;  %v1041_v16 = vpack.c.bf16 %v1009_v41, %v1009_v41  ;;  %v1203_v33 = vsel %vm1180_vm6, %v1165_v3, %v1202_v14  ;;  %v3425_v44 = vld [vmem:[#allocation32_spill] sm:$0xff]  ;;  %v3427_v49 = vld [vmem:[#allocation33_spill] sm:$0xff]  ;;  %v3429_v14 = vld [vmem:[#allocation34_spill] sm:$0xff] }
  0x99   : > { %v563_v58 = vadd.f32 %v562_v10, %v3410_v27  ;;  %v615_v24 = vadd.f32 %v614_v60, %v3412_v63  ;;  %v3416_v20 = vunpack.c.l.bf16 %v3415_v11  ;;  %v3418_v48 = vunpack.c.l.bf16 %v3417_v5 }
  0x9a   : > { %v671_v51 = vsel %vm566_vm0, %v3414_v4, 0.0  ;;  %v3420_v28 = vunpack.c.l.bf16 %v3419_v6  ;;  %v3422_v10 = vunpack.c.l.bf16 %v3421_v21  ;;  %v3424_v60 = vunpack.c.l.bf16 %v3423_v43  ;;  %v3433_v4 = vld [vmem:[#allocation28_spill] sm:$0xff] }
  0x9b   : > { %v667_v56 = vadd.f32 %v666_v57, %v3416_v20  ;;  %v3426_v35 = vunpack.c.l.bf16 %v3425_v44  ;;  %v3428_v3 = vunpack.c.l.bf16 %v3427_v49  ;;  %v3430_v23 = vunpack.c.l.bf16 %v3429_v14  ;;  %v3439_v21 = vld [vmem:[#allocation16_spill] sm:$0xff] }
  0x9c   : > { %v718_v38 = vadd.f32 %v3420_v28, %v3418_v48  ;;  %v564_v36 = vadd.f32 %v563_v58, %v3422_v10  ;;  %v616_v31 = vadd.f32 %v615_v24, %v3424_v60  ;;  %v1169_v27 = vunpack.c.l.b16 %v1041_v16  ;;  %v3435_v58 = vld [vmem:[#allocation39_spill] sm:$0xff]  ;;  %v3437_v48 = vld [vmem:[#allocation10_spill] sm:$0xff]  ;;  %v3443_v16 = vld [vmem:[#allocation40_spill] sm:$0xff] }
  0x9d   : > { %v723_v41 = vsel %vm566_vm0, %v3426_v35, 0.0  ;;  %v770_v57 = vadd.f32 %v3430_v23, %v3428_v3  ;;  %v3432_v63 = vunpack.c.l.bf16 %v3431_v59  ;;  %v3434_v11 = vunpack.c.l.bf16 %v3433_v4  ;;  %v3441_v60 = vld [vmem:[#allocation35_spill] sm:$0xff]  ;;  %v3445_v3 = vld [vmem:[#allocation41_spill] sm:$0xff] }
  0x9e   : > { %v3436_v5 = vunpack.c.l.bf16 %v3435_v58  ;;  %v3438_v6 = vunpack.c.l.bf16 %v3437_v48  ;;  %v3440_v10 = vunpack.c.l.bf16 %v3439_v21  ;;  %v3442_v44 = vunpack.c.l.bf16 %v3441_v60  ;;  %v3447_v23 = vld [vmem:[#allocation23_spill] sm:$0xff]  ;;  %v3449_v4 = vld [vmem:[#allocation29_spill] sm:$0xff]  ;;  %v3455_v60 = vld [vmem:[#allocation36_spill] sm:$0xff] }
  0x9f   : > { %v668_v50 = vadd.f32 %v667_v56, %v3432_v63  ;;  %v719_v20 = vadd.f32 %v718_v38, %v3434_v11  ;;  %v3444_v49 = vunpack.c.l.bf16 %v3443_v16  ;;  %v3446_v56 = vunpack.c.l.bf16 %v3445_v3  ;;  %v3459_v3 = vld [vmem:[#allocation30_spill] sm:$0xff] }
  0xa0   : > { %v775_v24 = vsel %vm566_vm0, %v3436_v5, 0.0  ;;  %v565_v28 = vadd.f32 %v564_v36, %v3438_v6  ;;  %v617_v43 = vadd.f32 %v616_v31, %v3440_v10  ;;  %v771_v35 = vadd.f32 %v770_v57, %v3442_v44  ;;  %v3451_v36 = vld [vmem:[#allocation46_spill] sm:$0xff]  ;;  %v3453_v57 = vld [vmem:[#allocation17_spill] sm:$0xff] }
  0xa1   : > { %v822_v14 = vadd.f32 %v3446_v56, %v3444_v49  ;;  %v1204_v38 = vsel %vm1182_vm7, %v1169_v27, %v1203_v33  ;;  %v3448_v59 = vunpack.c.l.bf16 %v3447_v23  ;;  %v3450_v11 = vunpack.c.l.bf16 %v3449_v4  ;;  %v3457_v49 = vld [vmem:[#allocation24_spill] sm:$0xff]  ;;  %v3461_v23 = vld [vmem:[#allocation42_spill] sm:$0xff]  ;;  %v3463_v4 = vld [vmem:[#allocation47_spill] sm:$0xff] }
  0xa2   : > { %v3452_v5 = vunpack.c.l.bf16 %v3451_v36  ;;  %v1208_v48 = vpack.c.b16 %v1204_v38, %v1204_v38  ;;  %v568_v6 = vadd.f32 %v567_v54, %v565_v28  ;;  %v3454_v21 = vunpack.c.l.bf16 %v3453_v57  ;;  %v3465_v36 = vld [vmem:[#allocation48_spill] sm:$0xff] }
  0xa3   : > { %v669_v63 = vadd.f32 %v668_v50, %v3448_v59  ;;  %v720_v58 = vadd.f32 %v719_v20, %v3450_v11  ;;  %v3456_v44 = vunpack.c.l.bf16 %v3455_v60  ;;  %v3458_v33 = vunpack.c.l.bf16 %v3457_v49 }
  0xa4   : > { %v827_v31 = vsel %vm566_vm0, %v3452_v5, 0.0  ;;  %v618_v10 = vadd.f32 %v617_v43, %v3454_v21  ;;  %v3460_v50 = vunpack.c.l.bf16 %v3459_v3  ;;  %v3462_v20 = vunpack.c.l.bf16 %v3461_v23  ;;  %1477 = vmatprep.mubr.bf16.mxu1 %v1208_v48  ;;  %v3467_v5 = vld [vmem:[#allocation37_spill] sm:$0xff] }
  0xa5   : > { %v772_v16 = vadd.f32 %v771_v35, %v3456_v44  ;;  %v670_v27 = vadd.f32 %v669_v63, %v3458_v33  ;;  %v3464_v11 = vunpack.c.l.bf16 %v3463_v4  ;;  %v3466_v38 = vunpack.c.l.bf16 %v3465_v36  ;;  %v3469_v21 = vld [vmem:[#allocation53_spill] sm:$0xff] }
  0xa6   : > { %v721_v56 = vadd.f32 %v720_v58, %v3460_v50  ;;  %v823_v59 = vadd.f32 %v822_v14, %v3462_v20  ;;  %v569_v28 = vrot.slane %v568_v6, 4  ;;  %v620_v43 = vadd.f32 %v619_v9, %v618_v10  ;;  %v3471_v58 = vld [vmem:[#allocation31_spill] sm:$0xff]  ;;  %v3475_v23 = vld [vmem:[#allocation49_spill] sm:$0xff]  ;;  %v3477_v9 = vld [vmem:[#allocation38_spill] sm:$0xff] }
  0xa7   : > { %v874_v54 = vadd.f32 %v3466_v38, %v3464_v11  ;;  %v3468_v57 = vunpack.c.l.bf16 %v3467_v5  ;;  %v3470_v60 = vunpack.c.l.bf16 %v3469_v21  ;;  %v672_v44 = vadd.f32 %v671_v51, %v670_v27  ;;  %v3473_v14 = vld [vmem:[#allocation43_spill] sm:$0xff] }
  0xa8   : > { %v3472_v49 = vunpack.c.l.bf16 %v3471_v58  ;;  %v3474_v3 = vunpack.c.l.bf16 %v3473_v14  ;;  %v3476_v20 = vunpack.c.l.bf16 %v3475_v23  ;;  %v570_v48 = vadd.f32 %v569_v28, %v568_v6  ;;  %v3481_v5 = vld [vmem:[#allocation55_spill] sm:$0xff]  ;;  %v3487_v28 = vld [vmem:[#allocation56_spill] sm:$0xff] }
  0xa9   : > { %v773_v35 = vadd.f32 %v772_v16, %v3468_v57  ;;  %v879_v63 = vsel %vm566_vm0, %v3470_v60, 0.0  ;;  %v621_v11 = vrot.slane %v620_v43, 4  ;;  %v3478_v10 = vunpack.c.l.bf16 %v3477_v9  ;;  %v3479_v16 = vld [vmem:[#allocation54_spill] sm:$0xff]  ;;  %v3483_v60 = vld [vmem:[#allocation44_spill] sm:$0xff] }
  0xaa   : > { %v722_v33 = vadd.f32 %v721_v56, %v3472_v49  ;;  %v824_v50 = vadd.f32 %v823_v59, %v3474_v3  ;;  %v875_v4 = vadd.f32 %v874_v54, %v3476_v20  ;;  %v3480_v38 = vunpack.c.l.bf16 %v3479_v16  ;;  %v3485_v49 = vld [vmem:[#allocation50_spill] sm:$0xff] }
  0xab   : > { %v774_v36 = vadd.f32 %v773_v35, %v3478_v10  ;;  %v3482_v57 = vunpack.c.l.bf16 %v3481_v5  ;;  %v673_v51 = vrot.slane %v672_v44, 4  ;;  %v3484_v56 = vunpack.c.l.bf16 %v3483_v60  ;;  %v3489_v10 = vld [vmem:[#allocation45_spill] sm:$0xff] }
  0xac   : > { %v724_v27 = vadd.f32 %v723_v41, %v722_v33  ;;  %v3486_v59 = vunpack.c.l.bf16 %v3485_v49  ;;  %v571_v3 = vrot.slane %v570_v48, 2  ;;  %v622_v54 = vadd.f32 %v621_v11, %v620_v43  ;;  %v3495_v11 = vld [vmem:[#allocation52_spill] sm:$0xff] }
  0xad   : > { %v926_v21 = vadd.f32 %v3482_v57, %v3480_v38  ;;  %v825_v58 = vadd.f32 %v824_v50, %v3484_v56  ;;  %v776_v6 = vadd.f32 %v775_v24, %v774_v36  ;;  %v3488_v23 = vunpack.c.l.bf16 %v3487_v28  ;;  %v3491_v38 = vld [vmem:[#allocation51_spill] sm:$0xff]  ;;  %v3493_v56 = vld [vmem:[#allocation57_spill] sm:$0xff] }
  0xae   : > { %v876_v14 = vadd.f32 %v875_v4, %v3486_v59  ;;  %v674_v35 = vadd.f32 %v673_v51, %v672_v44  ;;  %v725_v9 = vrot.slane %v724_v27, 4  ;;  %v3490_v16 = vunpack.c.l.bf16 %v3489_v10 }
  0xaf   : > { %v927_v20 = vadd.f32 %v926_v21, %v3488_v23  ;;  %v3492_v57 = vunpack.c.l.bf16 %v3491_v38  ;;  %v572_v33 = vadd.f32 %v571_v3, %v570_v48  ;;  %v623_v60 = vrot.slane %v622_v54, 2  ;;  %v3497_v23 = vld [vmem:[#allocation58_spill] sm:$0xff] }
  0xb0   : > { %v826_v5 = vadd.f32 %v825_v58, %v3490_v16  ;;  %v777_v50 = vrot.slane %v776_v6, 4  ;;  %v3494_v49 = vunpack.c.l.bf16 %v3493_v56  ;;  %v675_v59 = vrot.slane %v674_v35, 2 }
  0xb1   : > { %v877_v41 = vadd.f32 %v876_v14, %v3492_v57  ;;  %v726_v43 = vadd.f32 %v725_v9, %v724_v27  ;;  %v3496_v36 = vunpack.c.l.bf16 %v3495_v11  ;;  %v573_v44 = vrot.slane %v572_v33, 1 }
  0xb2   : > { %v928_v4 = vadd.f32 %v927_v20, %v3494_v49  ;;  %v828_v24 = vadd.f32 %v827_v31, %v826_v5  ;;  %v624_v51 = vadd.f32 %v623_v60, %v622_v54  ;;  %v778_v28 = vadd.f32 %v777_v50, %v776_v6  ;;  %v3499_v20 = vld [vmem:[#allocation59_spill] sm:$0xff]  ;;  %v3501_v6 = vld [vmem:[#allocation60_spill] sm:$0xff] }
  0xb3   : > { %v878_v21 = vadd.f32 %v877_v41, %v3496_v36  ;;  %v3498_v58 = vunpack.c.l.bf16 %v3497_v23  ;;  %v676_v16 = vadd.f32 %v675_v59, %v674_v35  ;;  %v727_v14 = vrot.slane %v726_v43, 2 }
  0xb4   : > { %v829_v48 = vrot.slane %v828_v24, 4  ;;  %v574_v38 = vadd.f32 %v573_v44, %v572_v33  ;;  %v625_v57 = vrot.slane %v624_v51, 1  ;;  %v779_v56 = vrot.slane %v778_v28, 2 }
  0xb5   : > { %v929_v10 = vadd.f32 %v928_v4, %v3498_v58  ;;  %v880_v3 = vadd.f32 %v879_v63, %v878_v21  ;;  %v3500_v49 = vunpack.c.l.bf16 %v3499_v20  ;;  %v677_v31 = vrot.slane %v676_v16, 1 }
  0xb6   : > { %v728_v9 = vadd.f32 %v727_v14, %v726_v43  ;;  %v830_v5 = vadd.f32 %v829_v48, %v828_v24  ;;  %v626_v11 = vadd.f32 %v625_v57, %v624_v51  ;;  %v780_v54 = vadd.f32 %v779_v56, %v778_v28 }
  0xb7   : > { %v930_v27 = vadd.f32 %v929_v10, %v3500_v49  ;;  %v881_v41 = vrot.slane %v880_v3, 4  ;;  %v3502_v60 = vunpack.c.l.bf16 %v3501_v6  ;;  %v978_v35 = vmul.f32 0.020408163, %v574_v38 }
  0xb8   : > { %v678_v4 = vadd.f32 %v677_v31, %v676_v16  ;;  %v729_v59 = vrot.slane %v728_v9, 1  ;;  %v831_v63 = vrot.slane %v830_v5, 2  ;;  %v781_v36 = vrot.slane %v780_v54, 1 }
  0xb9   : > { %v931_v50 = vsel %vm566_vm0, %v3502_v60, 0.0  ;;  %v882_v33 = vadd.f32 %v881_v41, %v880_v3  ;;  %v982_v44 = vmul.f32 0.020408163, %v626_v11  ;;  %v1010_v23 = vpack.c.bf16 %v978_v35, %v978_v35  ;;  %v3503_v3 = vld [vmem:[#allocation61_spill] sm:$0xff] }
  0xba   : > { %v932_v21 = vadd.f32 %v931_v50, %v930_v27  ;;  %v730_v58 = vadd.f32 %v729_v59, %v728_v9  ;;  %v832_v10 = vadd.f32 %v831_v63, %v830_v5  ;;  %v986_v24 = vmul.f32 0.020408163, %v678_v4 }
  0xbb   : > { %v883_v43 = vrot.slane %v882_v33, 2  ;;  %v782_v14 = vadd.f32 %v781_v36, %v780_v54  ;;  %v1014_v28 = vpack.c.bf16 %v982_v44, %v982_v44  ;;  %v1138_v48 = vunpack.c.l.b16 %v1010_v23 }
  0xbc   : > { %v933_v51 = vrot.slane %v932_v21, 4  ;;  %v833_v57 = vrot.slane %v832_v10, 1  ;;  %v990_v20 = vmul.f32 0.020408163, %v730_v58  ;;  %v1018_v38 = vpack.c.bf16 %v986_v24, %v986_v24 }
  0xbd   : > { %v884_v56 = vadd.f32 %v883_v43, %v882_v33  ;;  %v994_v49 = vmul.f32 0.020408163, %v782_v14  ;;  %v1142_v31 = vunpack.c.l.b16 %v1014_v28  ;;  %v3504_v41 = vunpack.c.l.bf16 %v3503_v3 }
  0xbe   : > { %v934_v16 = vadd.f32 %v933_v51, %v932_v21  ;;  %v3505_v27 = vunpack.c.l.bf16 %v2423_v32  ;;  %v834_v9 = vadd.f32 %v833_v57, %v832_v10  ;;  %v1022_v6 = vpack.c.bf16 %v990_v20, %v990_v20  ;;  %v3508_v10 = vld [vmem:[#allocation62_spill] sm:$0xff] }
  0xbf   : > { %v885_v5 = vrot.slane %v884_v56, 1  ;;  %v1146_v60 = vunpack.c.l.b16 %v1018_v38  ;;  %v1026_v50 = vpack.c.bf16 %v994_v49, %v994_v49  ;;  %v1171_v35 = vsel %vm1170_vm1, %v1142_v31, %v1138_v48  ;;  %v3514_v49 = vld [vmem:[#allocation64_spill] sm:$0xff] }
  0xc0   : > { %v588_v11 = vadd.f32 %v3505_v27, %v3504_v41  ;;  %v935_v54 = vrot.slane %v934_v16, 2  ;;  %v3506_v4 = vunpack.c.l.bf16 %v2427_v42  ;;  %v998_v33 = vmul.f32 0.020408163, %v834_v9  ;;  %v3510_v42 = vld [vmem:[#allocation63_spill] sm:$0xff] }
  0xc1   : > { %v886_v63 = vadd.f32 %v885_v5, %v884_v56  ;;  %v1150_v36 = vunpack.c.l.b16 %v1022_v6  ;;  %v1173_v21 = vsel %vm1172_vm2, %v1146_v60, %v1171_v35  ;;  %v1154_v23 = vunpack.c.l.b16 %v1026_v50  ;;  %v3517_v5 = vld [vmem:[#allocation65_spill] sm:$0xff]  ;;  %v3519_v60 = vld [vmem:[#allocation66_spill] sm:$0xff] }
  0xc2   : > { %v589_v59 = vadd.f32 %v588_v11, %v3506_v4  ;;  %v936_v44 = vadd.f32 %v935_v54, %v934_v16  ;;  %v3507_v32 = vunpack.c.l.bf16 %v2432_v53  ;;  %v3509_v43 = vunpack.c.l.bf16 %v3508_v10 }
  0xc3   : > { %v1002_v14 = vmul.f32 0.020408163, %v886_v63  ;;  %v1030_v51 = vpack.c.bf16 %v998_v33, %v998_v33  ;;  %v1175_v28 = vsel %vm1174_vm3, %v1150_v36, %v1173_v21  ;;  %v3511_v48 = vunpack.c.l.bf16 %v3510_v42  ;;  %v3523_v63 = vld [vmem:[#allocation67_spill] sm:$0xff]  ;;  %v3525_v36 = vld [vmem:[#allocation68_spill] sm:$0xff] }
  0xc4   : > { %v590_v58 = vadd.f32 %v589_v59, %v3507_v32  ;;  %v593_v24 = vsel %vm566_vm0, %v3509_v43, 0.0  ;;  %v3512_v57 = vunpack.c.l.bf16 %v2455_v30  ;;  %v937_v20 = vrot.slane %v936_v44, 1 }
  0xc5   : > { %v1177_v38 = vsel %vm1176_vm4, %v1154_v23, %v1175_v28  ;;  %v3513_v16 = vunpack.c.l.bf16 %v2435_v52  ;;  %v3515_v31 = vunpack.c.l.bf16 %v3514_v49  ;;  %v1034_v41 = vpack.c.bf16 %v1002_v14, %v1002_v14  ;;  %v3530_v28 = vld [vmem:[#allocation69_spill] sm:$0xff] }
  0xc6   : > { %v640_v56 = vadd.f32 %v3512_v57, %v3511_v48  ;;  %v1158_v27 = vunpack.c.l.b16 %v1030_v51  ;;  %v3516_v11 = vunpack.c.l.bf16 %v2462_v61  ;;  %v3518_v6 = vunpack.c.l.bf16 %v3517_v5 }
  0xc7   : > { %v591_v53 = vadd.f32 %v590_v58, %v3513_v16  ;;  %v645_v3 = vsel %vm566_vm0, %v3515_v31, 0.0  ;;  %v3520_v30 = vunpack.c.l.bf16 %v3519_v60  ;;  %v938_v50 = vadd.f32 %v937_v20, %v936_v44  ;;  %v3534_v16 = vld [vmem:[#allocation70_spill] sm:$0xff] }
  0xc8   : > { %v641_v9 = vadd.f32 %v640_v56, %v3516_v11  ;;  %v3521_v35 = vunpack.c.l.bf16 %v2440_v62  ;;  %v3522_v52 = vunpack.c.l.bf16 %v2515_v19  ;;  %v3524_v33 = vunpack.c.l.bf16 %v3523_v63  ;;  %v3539_v11 = vld [vmem:[#allocation72_spill] sm:$0xff] }
  0xc9   : > { %v692_v54 = vadd.f32 %v3520_v30, %v3518_v6  ;;  %v3526_v21 = vunpack.c.l.bf16 %v3525_v36  ;;  %v1162_v61 = vunpack.c.l.b16 %v1034_v41  ;;  %v1179_v32 = vsel %vm1178_vm5, %v1158_v27, %v1177_v38 }
  0xca   : > { %v592_v4 = vadd.f32 %v591_v53, %v3521_v35  ;;  %v697_v59 = vsel %vm566_vm0, %v3522_v52, 0.0  ;;  %v3527_v58 = vunpack.c.l.bf16 %v2465_v12  ;;  %v3528_v44 = vunpack.c.l.bf16 %v2497_v8  ;;  %v3536_v53 = vld [vmem:[#allocation71_spill] sm:$0xff] }
  0xcb   : > { %v744_v23 = vadd.f32 %v3526_v21, %v3524_v33  ;;  %v1006_v62 = vmul.f32 0.020408163, %v938_v50  ;;  %v3529_v19 = vunpack.c.l.bf16 %v2528_v18  ;;  %v3531_v42 = vunpack.c.l.bf16 %v3530_v28  ;;  %v3544_v50 = vld [vmem:[#allocation73_spill] sm:$0xff] }
  0xcc   : > { %v642_v10 = vadd.f32 %v641_v9, %v3527_v58  ;;  %v693_v43 = vadd.f32 %v692_v54, %v3528_v44  ;;  %v594_v14 = vadd.f32 %v593_v24, %v592_v4  ;;  %v1181_v57 = vsel %vm1180_vm6, %v1162_v61, %v1179_v32  ;;  %v3548_v21 = vld [vmem:[#allocation77_spill] sm:$0xff] }
  0xcd   : > { %v745_v51 = vadd.f32 %v744_v23, %v3529_v19  ;;  %v749_v48 = vsel %vm566_vm0, %v3531_v42, 0.0  ;;  %v3532_v56 = vunpack.c.l.bf16 %v2470_v13  ;;  %v3533_v12 = vunpack.c.l.bf16 %v2500_v15 }
  0xce   : > { %v3535_v8 = vunpack.c.l.bf16 %v3534_v16  ;;  %v3537_v49 = vunpack.c.l.bf16 %v3536_v53  ;;  %v1038_v31 = vpack.c.bf16 %v1006_v62, %v1006_v62  ;;  %v595_v18 = vrot.slane %v594_v14, 4 }
  0xcf   : > { %v643_v20 = vadd.f32 %v642_v10, %v3532_v56  ;;  %v694_v38 = vadd.f32 %v693_v43, %v3533_v12  ;;  %v3538_v41 = vunpack.c.l.bf16 %v2535_v55  ;;  %v3540_v9 = vunpack.c.l.bf16 %v3539_v11 }
  0xd0   : > { %v796_v24 = vadd.f32 %v3537_v49, %v3535_v8  ;;  %v3541_v13 = vunpack.c.l.bf16 %v2473_v2  ;;  %v3542_v15 = vunpack.c.l.bf16 %v2506_v22  ;;  %v3543_v30 = vunpack.c.l.bf16 %v2565_v45  ;;  %v3561_v8 = vld [vmem:[#allocation80_spill] sm:$0xff] }
  0xd1   : > { %v746_v27 = vadd.f32 %v745_v51, %v3538_v41  ;;  %v801_v5 = vsel %vm566_vm0, %v3540_v9, 0.0  ;;  %v3545_v35 = vunpack.c.l.bf16 %v3544_v50  ;;  %v3546_v4 = vunpack.c.l.bf16 %v2595_v7  ;;  %v3556_v51 = vld [vmem:[#allocation79_spill] sm:$0xff]  ;;  %v3564_v41 = vld [vmem:[#allocation84_spill] sm:$0xff] }
  0xd2   : > { %v644_v6 = vadd.f32 %v643_v20, %v3541_v13  ;;  %v695_v60 = vadd.f32 %v694_v38, %v3542_v15  ;;  %v797_v54 = vadd.f32 %v796_v24, %v3543_v30  ;;  %v1166_v55 = vunpack.c.l.b16 %v1038_v31  ;;  %v3559_v38 = vld [vmem:[#allocation74_spill] sm:$0xff]  ;;  %v3566_v9 = vld [vmem:[#allocation75_spill] sm:$0xff] }
  0xd3   : > { %v848_v52 = vadd.f32 %v3546_v4, %v3545_v35  ;;  %v596_v63 = vadd.f32 %v595_v18, %v594_v14  ;;  %v3547_v33 = vunpack.c.l.bf16 %v2538_v1  ;;  %v3549_v23 = vunpack.c.l.bf16 %v3548_v21  ;;  %v3554_v14 = vld [vmem:[#allocation78_spill] sm:$0xff]  ;;  %v3570_v35 = vld [vmem:[#allocation85_spill] sm:$0xff] }
  0xd4   : > { %v646_v61 = vadd.f32 %v645_v3, %v644_v6  ;;  %v3550_v22 = vunpack.c.l.bf16 %v2509_v39  ;;  %v3551_v45 = vunpack.c.l.bf16 %v2568_v25  ;;  %v3552_v10 = vunpack.c.l.bf16 %v2598_v29  ;;  %v3568_v6 = vld [vmem:[#allocation81_spill] sm:$0xff] }
  0xd5   : > { %v747_v36 = vadd.f32 %v746_v27, %v3547_v33  ;;  %v853_v2 = vsel %vm566_vm0, %v3549_v23, 0.0  ;;  %v1183_v44 = vsel %vm1182_vm7, %v1166_v55, %v1181_v57  ;;  %v597_v43 = vrot.slane %v596_v63, 2 }
  0xd6   : > { %v696_v32 = vadd.f32 %v695_v60, %v3550_v22  ;;  %v798_v58 = vadd.f32 %v797_v54, %v3551_v45  ;;  %v849_v7 = vadd.f32 %v848_v52, %v3552_v10  ;;  %v3553_v1 = vunpack.c.l.bf16 %v2545_v46  ;;  %v3572_v52 = vld [vmem:[#allocation86_spill] sm:$0xff] }
  0xd7   : > { %v3555_v19 = vunpack.c.l.bf16 %v3554_v14  ;;  %v3557_v28 = vunpack.c.l.bf16 %v3556_v51  ;;  %v1205_v42 = vpack.c.b16 %v1183_v44, %v1183_v44  ;;  %v647_v39 = vrot.slane %v646_v61, 4 }
  0xd8   : > { %v748_v62 = vadd.f32 %v747_v36, %v3553_v1  ;;  %v698_v56 = vadd.f32 %v697_v59, %v696_v32  ;;  %v3558_v25 = vunpack.c.l.bf16 %v2575_v47  ;;  %v598_v12 = vadd.f32 %v597_v43, %v596_v63 }
  0xd9   : > { %v900_v3 = vadd.f32 %v3557_v28, %v3555_v19  ;;  %v3560_v16 = vunpack.c.l.bf16 %v3559_v38  ;;  %v3562_v53 = vunpack.c.l.bf16 %v3561_v8  ;;  %1438 = vmatmul.mubr.bf16.vlgmr.msra.gmra.mxu0 %v1205_v42  ;;  %v648_v49 = vadd.f32 %v647_v39, %v646_v61 }
  0xda   : > { %v799_v20 = vadd.f32 %v798_v58, %v3558_v25  ;;  %v750_v29 = vadd.f32 %v749_v48, %v748_v62  ;;  %v699_v24 = vrot.slane %v698_v56, 4  ;;  %v3563_v31 = vunpack.c.l.bf16 %v2578_v40  ;;  %v3576_v58 = vld [vmem:[#allocation87_spill] sm:$0xff] }
  0xdb   : > { %v850_v57 = vadd.f32 %v849_v7, %v3560_v16  ;;  %v901_v46 = vadd.f32 %v900_v3, %v3562_v53  ;;  %v3565_v27 = vunpack.c.l.bf16 %v3564_v41  ;;  %v599_v47 = vrot.slane %v598_v12, 1 }
  0xdc   : > { %v800_v18 = vadd.f32 %v799_v20, %v3563_v31  ;;  %v751_v11 = vrot.slane %v750_v29, 4  ;;  %v3567_v48 = vunpack.c.l.bf16 %v3566_v9  ;;  %v3569_v15 = vunpack.c.l.bf16 %v3568_v6 }
  0xdd   : > { %v905_v59 = vsel %vm566_vm0, %v3565_v27, 0.0  ;;  %v649_v30 = vrot.slane %v648_v49, 2  ;;  %v700_v54 = vadd.f32 %v699_v24, %v698_v56  ;;  %v3571_v4 = vunpack.c.l.bf16 %v3570_v35 }
  0xde   : > { %v851_v13 = vadd.f32 %v850_v57, %v3567_v48  ;;  %v902_v60 = vadd.f32 %v901_v46, %v3569_v15  ;;  %v802_v50 = vadd.f32 %v801_v5, %v800_v18  ;;  %v3573_v40 = vunpack.c.l.bf16 %v3572_v52 }
  0xdf   : > { %v600_v63 = vadd.f32 %v599_v47, %v598_v12  ;;  %v752_v33 = vadd.f32 %v751_v11, %v750_v29  ;;  %v3574_v36 = vunpack.c.l.bf16 %v3384_v37  ;;  %v3575_v23 = vunpack.c.l.bf16 %v3382_v17  ;;  %v3580_v17 = vld [vmem:[#allocation88_spill] sm:$0xff]  ;;  %v3582_v29 = vld [vmem:[#allocation89_spill] sm:$0xff] }
  0xe0   : > { %v952_v55 = vadd.f32 %v3573_v40, %v3571_v4  ;;  %v650_v22 = vadd.f32 %v649_v30, %v648_v49  ;;  %v701_v32 = vrot.slane %v700_v54, 2  ;;  %v803_v45 = vrot.slane %v802_v50, 4 }
  0xe1   : > { %v852_v21 = vadd.f32 %v851_v13, %v3574_v36  ;;  %v903_v61 = vadd.f32 %v902_v60, %v3575_v23  ;;  %v3577_v10 = vunpack.c.l.bf16 %v3576_v58  ;;  %v753_v5 = vrot.slane %v752_v33, 2 }
  0xe2   : > { %v3578_v43 = vunpack.c.l.bf16 %v3386_v0  ;;  %v3579_v62 = vunpack.c.l.bf16 %v3389_v26  ;;  %v651_v37 = vrot.slane %v650_v22, 1  ;;  %v702_v19 = vadd.f32 %v701_v32, %v700_v54 }
  0xe3   : > { %v953_v7 = vadd.f32 %v952_v55, %v3577_v10  ;;  %v854_v44 = vadd.f32 %v853_v2, %v852_v21  ;;  %v804_v51 = vadd.f32 %v803_v45, %v802_v50  ;;  %v3581_v28 = vunpack.c.l.bf16 %v3580_v17 }
  0xe4   : > { %v904_v1 = vadd.f32 %v903_v61, %v3578_v43  ;;  %v957_v14 = vsel %vm566_vm0, %v3579_v62, 0.0  ;;  %v754_v42 = vadd.f32 %v753_v5, %v752_v33  ;;  %v980_v25 = vmul.f32 0.020408163, %v600_v63 }
  0xe5   : > { %v954_v3 = vadd.f32 %v953_v7, %v3581_v28  ;;  %v855_v39 = vrot.slane %v854_v44, 4  ;;  %v652_v20 = vadd.f32 %v651_v37, %v650_v22  ;;  %v703_v12 = vrot.slane %v702_v19, 1 }
  0xe6   : > { %v906_v56 = vadd.f32 %v905_v59, %v904_v1  ;;  %v805_v2 = vrot.slane %v804_v51, 2  ;;  %v3583_v0 = vunpack.c.l.bf16 %v3582_v29  ;;  %v755_v16 = vrot.slane %v754_v42, 1 }
  0xe7   : > { %v856_v26 = vadd.f32 %v855_v39, %v854_v44  ;;  %v1012_v8 = vpack.c.bf16 %v980_v25, %v980_v25  ;;  %v704_v53 = vadd.f32 %v703_v12, %v702_v19  ;;  %v3584_v49 = vunpack.c.l.bf16 %v2685_v34 }
  0xe8   : > { %v955_v38 = vadd.f32 %v954_v3, %v3583_v0  ;;  %v907_v57 = vrot.slane %v906_v56, 4  ;;  %v806_v46 = vadd.f32 %v805_v2, %v804_v51  ;;  %v984_v31 = vmul.f32 0.020408163, %v652_v20 }
  0xe9   : > { %v756_v18 = vadd.f32 %v755_v16, %v754_v42  ;;  %v857_v41 = vrot.slane %v856_v26, 2  ;;  %v1140_v59 = vunpack.c.l.b16 %v1012_v8  ;;  %v988_v9 = vmul.f32 0.020408163, %v704_v53 }
  0xea   : > { %v956_v24 = vadd.f32 %v955_v38, %v3584_v49  ;;  %v908_v27 = vadd.f32 %v907_v57, %v906_v56  ;;  %v807_v47 = vrot.slane %v806_v46, 1  ;;  %v1016_v48 = vpack.c.bf16 %v984_v31, %v984_v31 }
  0xeb   : > { %v858_v13 = vadd.f32 %v857_v41, %v856_v26  ;;  %v992_v15 = vmul.f32 0.020408163, %v756_v18  ;;  %v1020_v54 = vpack.c.bf16 %v988_v9, %v988_v9  ;;  %v1648_v26 = vld [vmem:[%s3109_s2] ss:$0 sm:$0xff] }
  0xec   : > { %v958_v11 = vadd.f32 %v957_v14, %v956_v24  ;;  %v909_v6 = vrot.slane %v908_v27, 2  ;;  %v808_v60 = vadd.f32 %v807_v47, %v806_v46  ;;  %v1144_v50 = vunpack.c.l.b16 %v1016_v48 }
  0xed   : > { %v859_v35 = vrot.slane %v858_v13, 1  ;;  %v1024_v34 = vpack.c.bf16 %v992_v15, %v992_v15  ;;  %v1148_v55 = vunpack.c.l.b16 %v1020_v54 }
  0xee   : > { %v959_v30 = vrot.slane %v958_v11, 4  ;;  %v910_v4 = vadd.f32 %v909_v6, %v908_v27  ;;  %v996_v40 = vmul.f32 0.020408163, %v808_v60  ;;  %v1191_v63 = vsel %vm1170_vm1, %v1144_v50, %v1140_v59 }
  0xef   : > { %v860_v33 = vadd.f32 %v859_v35, %v858_v13  ;;  %v1152_v21 = vunpack.c.l.b16 %v1024_v34  ;;  %v1192_v22 = vsel %vm1172_vm2, %v1148_v55, %v1191_v63 }
  0xf0   : > { %v960_v52 = vadd.f32 %v959_v30, %v958_v11  ;;  %v911_v36 = vrot.slane %v910_v4, 1  ;;  %v1028_v61 = vpack.c.bf16 %v996_v40, %v996_v40 }
  0xf1   : > { %v1000_v45 = vmul.f32 0.020408163, %v860_v33  ;;  %v1193_v58 = vsel %vm1174_vm3, %v1152_v21, %v1192_v22 }
  0xf2   : > { %v961_v23 = vrot.slane %v960_v52, 2  ;;  %v912_v32 = vadd.f32 %v911_v36, %v910_v4  ;;  %v1156_v7 = vunpack.c.l.b16 %v1028_v61 }
  0xf3   : > { %v1032_v44 = vpack.c.bf16 %v1000_v45, %v1000_v45 }
  0xf4   : > { %v962_v10 = vadd.f32 %v961_v23, %v960_v52  ;;  %v1004_v5 = vmul.f32 0.020408163, %v912_v32  ;;  %v1194_v1 = vsel %vm1176_vm4, %v1156_v7, %v1193_v58 }
  0xf5   : > { %v1160_v14 = vunpack.c.l.b16 %v1032_v44 }
  0xf6   : > { %v963_v43 = vrot.slane %v962_v10, 1  ;;  %v1036_v62 = vpack.c.bf16 %v1004_v5, %v1004_v5 }
  0xf7   : > { %v1195_v51 = vsel %vm1178_vm5, %v1160_v14, %v1194_v1 }
  0xf8   : > { %v964_v37 = vadd.f32 %v963_v43, %v962_v10  ;;  %v1164_v19 = vunpack.c.l.b16 %v1036_v62 }
  0xfa   : > { %v1008_v17 = vmul.f32 0.020408163, %v964_v37  ;;  %v1196_v28 = vsel %vm1180_vm6, %v1164_v19, %v1195_v51 }
  0xfc   : > { %v1040_v3 = vpack.c.bf16 %v1008_v17, %v1008_v17 }
  0xfe   : > { %v1168_v42 = vunpack.c.l.b16 %v1040_v3 }
 0x100   : > { %v1197_v39 = vsel %vm1182_vm7, %v1168_v42, %v1196_v28 }
 0x101   : > { %v1207_v56 = vpack.c.b16 %v1197_v39, %v1197_v39 }
 0x103   : > { %1478 = vmatmul.mubr.bf16.vlgmr.msra.gmra.mxu1 %v1207_v56 }
 0x199   : > { %v1669_v25 = vpop.f32.mrf.mxu0 }
 0x19b   : > { %v1670_v20 = vpop.f32.mrf.mxu0 }
 0x19c   : > { %v1671_v0 = vadd.f32 %v1670_v20, %v1669_v25 }
 0x19d   : > { %v1672_v12 = vpop.f32.mrf.mxu0 }
 0x19f   : > { %v1673_v2 = vpop.f32.mrf.mxu0 }
 0x1c3   : > { %v1691_v29 = vpop.f32.mrf.mxu1 }
 0x1c5   : > { %v1692_v38 = vpop.f32.mrf.mxu1 }
 0x1c6   : > { %v1693_v16 = vadd.f32 %v1692_v38, %v1691_v29 }
 0x1c7   : > { %v1694_v57 = vpop.f32.mrf.mxu1 }
 0x1c8   : > { %v1480_v8 = vadd.f32 %v1693_v16, %v1671_v0 }
 0x1c9   : > { %v1695_v53 = vpop.f32.mrf.mxu1 }
 0x1ca   : > { %v1496_v46 = vadd.f32 %v1648_v26, %v1480_v8 }
 0x1cc   : > { %1497 = vst [vmem:[%s205_s6] sm:$0xff] %v1496_v46 }
 0x1cd   : > { %1798 = shalt.err (!%p1795_p5)
}
 0x1ce   : > { %s1799_s23 = scalar_lea.hbm %s1517_s10, 128  ;;  %s1803_s28 = scalar_lea.hbm %s3110_s3, 256 }
 0x1cf   : > { %p1800_p6 = scmp.ne.s32.totalorder %s1517_s10, %s1799_s23  ;;  %p1804_p10 = scmp.lt.s32.totalorder %s1517_s10, %s3110_s3 }
 0x1d0   : > { %p1805_p11 = scmp.lt.s32.totalorder %s1803_s28, %s1799_s23 }
 0x1d1   : > { %p1801_p7 = pnand %p1800_p6, %p1924_p4 }
 0x1d2   : > { %p1806_p12 = por %p1805_p11, %p1804_p10 }
 0x1d3   : > { %p1802_p9 = pneg %p1801_p7 }
 0x1d5   : > { %p1807_p13 = pnand %p1806_p12, %p1802_p9 }
 0x1d7   : > { %1810 = shalt.err (!%p1807_p13)
}
 0x1d8   : > { %1698 = dma.vmem_to_hbm [thread:$0]  (%p1924_p4), %s1520_s7, 128, %s1517_s10, %s1506_s18  }
 0x1d9 PF: > { %p1704_p0 = scmp.ge.s32.totalorder %s1861_s17, 2  ;;  %s1531_s4 = sand.u32 1, %s1841_s12  }
 0x1da   : > { %s1532_s5 = scalar_lea.sflag [#allocation3], %s1531_s4 }
 0x1db   : > { %p1701_p1 = pnand %p1704_p0, %p1931_p8 }
 0x1dd   : > { %p1702_p2 = pneg %p1701_p1 }
 0x1df   : > { %1836 = dma.done.wait (%p1702_p2), %s1532_s5, 128  }
 0x1e0   : > { %1838 = vsyncadd (%p1702_p2), %s1532_s5, 4294967168  ;;  %s16_s17 = sadd.s32 1, %s1861_s17   ;;  %s3585_s12 = smov %s1845_s13 }
 0x1e1   : > { %p13_p3 = scmp.ge.s32.totalorder %s16_s17, 4   ;;  %s3586_s13 = smov %s1849_s14 }
 0x1e2   : > { %s3587_s14 = smov %s1937_s25  ;;  %s3588_s15 = smov %s1857_s16 }
 0x1e3   : > { %s3589_s16 = smov %s3591_s20  ;;  %15 = sbr.rel (!%p13_p3) target bundleno = 4 (0x4), region = 78 }
 0x1e8   :  { %1537 = vsyncpa [#allocation3], 1 }
 0x1e9   :  { %1539 = vsyncpa [#allocation3 + $0x1], 1 }

</bundles_post_ra>
